<compile_context>
chip_gen: v7x
topology: tpu7x:2x2x1
jax: 0.10.0
libtpu: 0.0.40
codegen_flags: <defaults>
</compile_context>

<pallas_src>
import functools

import jax
import jax.numpy as jnp
from jax import lax
from jax.experimental import pallas as pl
from jax.experimental.pallas import tpu as pltpu

# Small, forward-consistent shapes.
B, S, D, H, FF, V, C = 2, 8, 32, 2, 64, 64, 4
DH = D // H


# ----------------------------- in-kernel helpers -----------------------------
def _layernorm(x, g, b, eps=1e-12):
    mu = jnp.mean(x, axis=-1, keepdims=True)
    var = jnp.mean(jnp.square(x - mu), axis=-1, keepdims=True)
    return (x - mu) * lax.rsqrt(var + eps) * g + b


def _gelu(y):
    # tanh-approx GELU
    return 0.5 * y * (1.0 + jnp.tanh(0.7978845608028654 * (y + 0.044715 * y * y * y)))


# ----------------------------- fused forward kernel --------------------------
def _fused_forward_kernel(
    ids_ref, mask_ref, labels_ref,
    tok_ref, pos_ref, ln_e_g_ref, ln_e_b_ref,
    w_qkv_ref, b_qkv_ref, w_o_ref, b_o_ref, ln1_g_ref, ln1_b_ref,
    w_ff1_ref, b_ff1_ref, w_ff2_ref, b_ff2_ref, ln2_g_ref, ln2_b_ref,
    w_pool_ref, b_pool_ref, w_cls_ref, b_cls_ref,
    logits_ref, loss_ref,
):
    f32 = jnp.float32

    # ---- embedding: one-hot(ids) @ tok_emb + pos_emb, then LayerNorm --------
    ids = ids_ref[...]                                             # (B*S, 1) i32
    vocab_iota = lax.broadcasted_iota(jnp.int32, (B * S, V), 1)    # (B*S, V)
    onehot_ids = (ids == vocab_iota).astype(f32)                   # (B*S, V)
    x = jnp.dot(onehot_ids, tok_ref[...], preferred_element_type=f32)
    x = x + pos_ref[...]
    x2 = _layernorm(x, ln_e_g_ref[...], ln_e_b_ref[...])           # (B*S, D)

    # ---- multi-head self-attention (heads unrolled, all static slices) ------
    qkv = jnp.dot(x2, w_qkv_ref[...], preferred_element_type=f32) + b_qkv_ref[...]
    mask = mask_ref[...]                                           # (B, S) f32
    scale = 1.0 / (DH ** 0.5)

    ctx_rows = []
    for b in range(B):
        mask_b = mask[b:b + 1, :]                                  # (1, S)
        head_ctx = []
        for h in range(H):
            r0, r1 = b * S, (b + 1) * S
            q = qkv[r0:r1, h * DH:(h + 1) * DH]                    # (S, DH)
            k = qkv[r0:r1, D + h * DH:D + (h + 1) * DH]            # (S, DH)
            v = qkv[r0:r1, 2 * D + h * DH:2 * D + (h + 1) * DH]    # (S, DH)
            s = lax.dot_general(q, k, (((1,), (1,)), ((), ())),
                                preferred_element_type=f32) * scale  # (S, S)
            s = s + (1.0 - mask_b) * (-1e9)
            s = s - jnp.max(s, axis=-1, keepdims=True)
            p = jnp.exp(s)
            p = p * pl.reciprocal(jnp.sum(p, axis=-1, keepdims=True), approx=True)
            head_ctx.append(jnp.dot(p, v, preferred_element_type=f32))
        ctx_rows.append(jnp.concatenate(head_ctx, axis=1))          # (S, D)
    ctx = jnp.concatenate(ctx_rows, axis=0)                         # (B*S, D)

    attn_out = jnp.dot(ctx, w_o_ref[...], preferred_element_type=f32) + b_o_ref[...]
    h1 = _layernorm(attn_out + x2, ln1_g_ref[...], ln1_b_ref[...])

    # ---- feed-forward --------------------------------------------------------
    ff = _gelu(jnp.dot(h1, w_ff1_ref[...], preferred_element_type=f32) + b_ff1_ref[...])
    ff = jnp.dot(ff, w_ff2_ref[...], preferred_element_type=f32) + b_ff2_ref[...]
    h2 = _layernorm(ff + h1, ln2_g_ref[...], ln2_b_ref[...])        # (B*S, D)

    # ---- pooler (CLS token) + classifier -------------------------------------
    cls = jnp.concatenate([h2[b * S:b * S + 1, :] for b in range(B)], axis=0)  # (B, D)
    pooled = jnp.tanh(jnp.dot(cls, w_pool_ref[...], preferred_element_type=f32)
                      + b_pool_ref[...])
    logits = jnp.dot(pooled, w_cls_ref[...], preferred_element_type=f32) + b_cls_ref[...]
    logits_ref[...] = logits                                        # (B, C)

    # ---- cross-entropy (mean over batch), one-hot built in-kernel ------------
    labels = labels_ref[...]                                        # (B, 1) i32
    class_iota = lax.broadcasted_iota(jnp.int32, (B, C), 1)
    onehot_lbl = (labels == class_iota).astype(f32)                 # (B, C)
    z = logits - jnp.max(logits, axis=-1, keepdims=True)
    lse = jnp.log(jnp.sum(jnp.exp(z), axis=-1, keepdims=True))
    logp = z - lse
    nll = -jnp.sum(onehot_lbl * logp, axis=-1, keepdims=True)       # (B, 1)
    loss_ref[...] = jnp.sum(nll, axis=0, keepdims=True) / float(B)  # (1, 1)


def _full_block(shape):
    return pl.BlockSpec(shape, lambda i, n=len(shape): (0,) * n)


# ----------------------------- parameters ------------------------------------
def init_params(key):
    ks = jax.random.split(key, 8)
    s = 0.02
    p = {}
    p["tok_emb"] = jax.random.normal(ks[0], (V, D), jnp.float32) * s
    p["pos_emb"] = jax.random.normal(ks[1], (S, D), jnp.float32) * s
    p["ln_emb_g"] = jnp.ones((D,), jnp.float32)
    p["ln_emb_b"] = jnp.zeros((D,), jnp.float32)
    p["w_qkv"] = jax.random.normal(ks[2], (D, 3 * D), jnp.float32) * s
    p["b_qkv"] = jnp.zeros((3 * D,), jnp.float32)
    p["w_o"] = jax.random.normal(ks[3], (D, D), jnp.float32) * s
    p["b_o"] = jnp.zeros((D,), jnp.float32)
    p["ln1_g"] = jnp.ones((D,), jnp.float32)
    p["ln1_b"] = jnp.zeros((D,), jnp.float32)
    p["w_ff1"] = jax.random.normal(ks[4], (D, FF), jnp.float32) * s
    p["b_ff1"] = jnp.zeros((FF,), jnp.float32)
    p["w_ff2"] = jax.random.normal(ks[5], (FF, D), jnp.float32) * s
    p["b_ff2"] = jnp.zeros((D,), jnp.float32)
    p["ln2_g"] = jnp.ones((D,), jnp.float32)
    p["ln2_b"] = jnp.zeros((D,), jnp.float32)
    p["w_pool"] = jax.random.normal(ks[6], (D, D), jnp.float32) * s
    p["b_pool"] = jnp.zeros((D,), jnp.float32)
    p["w_cls"] = jax.random.normal(ks[7], (D, C), jnp.float32) * s
    p["b_cls"] = jnp.zeros((C,), jnp.float32)
    return p


# ----------------------------- forward (mirrors Model.forward) ---------------
@functools.partial(jax.jit, static_argnums=())
def _forward_impl(params, input_ids, attn_mask, labels):
    ids2 = input_ids.reshape(B * S, 1).astype(jnp.int32)
    mask2 = attn_mask.reshape(B, S).astype(jnp.float32)
    labels2 = labels.reshape(B, 1).astype(jnp.int32)
    pos_tiled = jnp.tile(params["pos_emb"], (B, 1))                  # (B*S, D)

    operands = [
        ids2, mask2, labels2,
        params["tok_emb"], pos_tiled,
        params["ln_emb_g"].reshape(1, D), params["ln_emb_b"].reshape(1, D),
        params["w_qkv"], params["b_qkv"].reshape(1, 3 * D),
        params["w_o"], params["b_o"].reshape(1, D),
        params["ln1_g"].reshape(1, D), params["ln1_b"].reshape(1, D),
        params["w_ff1"], params["b_ff1"].reshape(1, FF),
        params["w_ff2"], params["b_ff2"].reshape(1, D),
        params["ln2_g"].reshape(1, D), params["ln2_b"].reshape(1, D),
        params["w_pool"], params["b_pool"].reshape(1, D),
        params["w_cls"], params["b_cls"].reshape(1, C),
    ]
    in_specs = [_full_block(op.shape) for op in operands]

    logits, loss = pl.pallas_call(
        _fused_forward_kernel,
        out_shape=(jax.ShapeDtypeStruct((B, C), jnp.float32),
                   jax.ShapeDtypeStruct((1, 1), jnp.float32)),
        grid=(1,),
        in_specs=in_specs,
        out_specs=(_full_block((B, C)), _full_block((1, 1))),
        compiler_params=pltpu.CompilerParams(
            dimension_semantics=("arbitrary",)),
    )(*operands)
    return logits, loss[0, 0]


def forward(params, batch):
    inputs, labels = batch
    # mirrors inputs['input_ids'].squeeze()
    input_ids = jnp.squeeze(inputs["input_ids"])                     # (B, S)
    attn_mask = inputs["attention_mask"]                             # (B, S)
    return _forward_impl(params, input_ids, attn_mask, labels)


if __name__ == "__main__":
    key = jax.random.PRNGKey(0)
    pkey, ikey = jax.random.split(key)
    params = init_params(pkey)

    # inputs mimic the HF batch: input_ids (B, 1, S) -> squeezed, mask (B, S)
    input_ids = jax.random.randint(ikey, (B, 1, S), 0, V, dtype=jnp.int32)
    attention_mask = jnp.ones((B, S), dtype=jnp.int32)
    labels = jnp.array([1, 3], dtype=jnp.int32)
    batch = ({"input_ids": input_ids, "attention_mask": attention_mask}, labels)

    logits, loss = forward(params, batch)
    jax.block_until_ready((logits, loss))
    assert logits.shape == (B, C)
    assert loss.shape == ()
    assert bool(jnp.isfinite(loss))
    print("KERNEL_OK")
</pallas_src>

<mosaic_0001>
module attributes {stable_mosaic.version = 11 : i64} {
  func.func @_fused_forward_kernel(%arg0: i32, %arg1: memref<16x1xi32, #tpu.memory_space<vmem>>, %arg2: memref<2x8xf32, #tpu.memory_space<vmem>>, %arg3: memref<2x1xi32, #tpu.memory_space<vmem>>, %arg4: memref<64x32xf32, #tpu.memory_space<vmem>>, %arg5: memref<16x32xf32, #tpu.memory_space<vmem>>, %arg6: memref<1x32xf32, #tpu.memory_space<vmem>>, %arg7: memref<1x32xf32, #tpu.memory_space<vmem>>, %arg8: memref<32x96xf32, #tpu.memory_space<vmem>>, %arg9: memref<1x96xf32, #tpu.memory_space<vmem>>, %arg10: memref<32x32xf32, #tpu.memory_space<vmem>>, %arg11: memref<1x32xf32, #tpu.memory_space<vmem>>, %arg12: memref<1x32xf32, #tpu.memory_space<vmem>>, %arg13: memref<1x32xf32, #tpu.memory_space<vmem>>, %arg14: memref<32x64xf32, #tpu.memory_space<vmem>>, %arg15: memref<1x64xf32, #tpu.memory_space<vmem>>, %arg16: memref<64x32xf32, #tpu.memory_space<vmem>>, %arg17: memref<1x32xf32, #tpu.memory_space<vmem>>, %arg18: memref<1x32xf32, #tpu.memory_space<vmem>>, %arg19: memref<1x32xf32, #tpu.memory_space<vmem>>, %arg20: memref<32x32xf32, #tpu.memory_space<vmem>>, %arg21: memref<1x32xf32, #tpu.memory_space<vmem>>, %arg22: memref<32x4xf32, #tpu.memory_space<vmem>>, %arg23: memref<1x4xf32, #tpu.memory_space<vmem>>, %arg24: memref<2x4xf32, #tpu.memory_space<vmem>>, %arg25: memref<1x1xf32, #tpu.memory_space<vmem>>) attributes {dimension_semantics = [#tpu.dimension_semantics<arbitrary>], iteration_bounds = array<i64: 1>, scalar_prefetch = 0 : i64, scratch_operands = 0 : i64, tpu.core_type = #tpu.core_type<tc>, window_params = [{pipeline_mode = #tpu.pipeline_mode<synchronous>, transform_indices = @transform_0, window_bounds = array<i64: 16, 1>}, {pipeline_mode = #tpu.pipeline_mode<synchronous>, transform_indices = @transform_1, window_bounds = array<i64: 2, 8>}, {pipeline_mode = #tpu.pipeline_mode<synchronous>, transform_indices = @transform_2, window_bounds = array<i64: 2, 1>}, {pipeline_mode = #tpu.pipeline_mode<synchronous>, transform_indices = @transform_3, window_bounds = array<i64: 64, 32>}, {pipeline_mode = #tpu.pipeline_mode<synchronous>, transform_indices = @transform_4, window_bounds = array<i64: 16, 32>}, {pipeline_mode = #tpu.pipeline_mode<synchronous>, transform_indices = @transform_5, window_bounds = array<i64: 1, 32>}, {pipeline_mode = #tpu.pipeline_mode<synchronous>, transform_indices = @transform_6, window_bounds = array<i64: 1, 32>}, {pipeline_mode = #tpu.pipeline_mode<synchronous>, transform_indices = @transform_7, window_bounds = array<i64: 32, 96>}, {pipeline_mode = #tpu.pipeline_mode<synchronous>, transform_indices = @transform_8, window_bounds = array<i64: 1, 96>}, {pipeline_mode = #tpu.pipeline_mode<synchronous>, transform_indices = @transform_9, window_bounds = array<i64: 32, 32>}, {pipeline_mode = #tpu.pipeline_mode<synchronous>, transform_indices = @transform_10, window_bounds = array<i64: 1, 32>}, {pipeline_mode = #tpu.pipeline_mode<synchronous>, transform_indices = @transform_11, window_bounds = array<i64: 1, 32>}, {pipeline_mode = #tpu.pipeline_mode<synchronous>, transform_indices = @transform_12, window_bounds = array<i64: 1, 32>}, {pipeline_mode = #tpu.pipeline_mode<synchronous>, transform_indices = @transform_13, window_bounds = array<i64: 32, 64>}, {pipeline_mode = #tpu.pipeline_mode<synchronous>, transform_indices = @transform_14, window_bounds = array<i64: 1, 64>}, {pipeline_mode = #tpu.pipeline_mode<synchronous>, transform_indices = @transform_15, window_bounds = array<i64: 64, 32>}, {pipeline_mode = #tpu.pipeline_mode<synchronous>, transform_indices = @transform_16, window_bounds = array<i64: 1, 32>}, {pipeline_mode = #tpu.pipeline_mode<synchronous>, transform_indices = @transform_17, window_bounds = array<i64: 1, 32>}, {pipeline_mode = #tpu.pipeline_mode<synchronous>, transform_indices = @transform_18, window_bounds = array<i64: 1, 32>}, {pipeline_mode = #tpu.pipeline_mode<synchronous>, transform_indices = @transform_19, window_bounds = array<i64: 32, 32>}, {pipeline_mode = #tpu.pipeline_mode<synchronous>, transform_indices = @transform_20, window_bounds = array<i64: 1, 32>}, {pipeline_mode = #tpu.pipeline_mode<synchronous>, transform_indices = @transform_21, window_bounds = array<i64: 32, 4>}, {pipeline_mode = #tpu.pipeline_mode<synchronous>, transform_indices = @transform_22, window_bounds = array<i64: 1, 4>}, {pipeline_mode = #tpu.pipeline_mode<synchronous>, transform_indices = @transform_23, window_bounds = array<i64: 2, 4>}, {pipeline_mode = #tpu.pipeline_mode<synchronous>, transform_indices = @transform_24, window_bounds = array<i64: 1, 1>}]} {
    %c0 = arith.constant 0 : index
    %c0_0 = arith.constant 0 : index
    %0 = vector.load %arg1[%c0, %c0_0] : memref<16x1xi32, #tpu.memory_space<vmem>>, vector<16x1xi32>
    %1 = tpu.iota {dimensions = array<i32: 1>} : vector<16x64xi32>
    %2 = vector.broadcast %0 : vector<16x1xi32> to vector<16x64xi32>
    %3 = arith.cmpi eq, %2, %1 : vector<16x64xi32>
    %4 = arith.extui %3 : vector<16x64xi1> to vector<16x64xi32>
    %5 = arith.sitofp %4 : vector<16x64xi32> to vector<16x64xf32>
    %c0_1 = arith.constant 0 : index
    %c0_2 = arith.constant 0 : index
    %6 = vector.load %arg4[%c0_1, %c0_2] : memref<64x32xf32, #tpu.memory_space<vmem>>, vector<64x32xf32>
    %cst = arith.constant dense<0.000000e+00> : vector<16x32xf32>
    %7 = tpu.matmul %5, %6, %cst {dimension_numbers = #tpu.dot_dimension_numbers<[1], [0], [0], [1], [0, 0, 1, 1], [], []>} : vector<16x64xf32>, vector<64x32xf32>, vector<16x32xf32> -> vector<16x32xf32>
    %c0_3 = arith.constant 0 : index
    %c0_4 = arith.constant 0 : index
    %8 = vector.load %arg5[%c0_3, %c0_4] : memref<16x32xf32, #tpu.memory_space<vmem>>, vector<16x32xf32>
    %9 = arith.addf %7, %8 : vector<16x32xf32>
    %c0_5 = arith.constant 0 : index
    %c0_6 = arith.constant 0 : index
    %10 = vector.load %arg6[%c0_5, %c0_6] : memref<1x32xf32, #tpu.memory_space<vmem>>, vector<1x32xf32>
    %c0_7 = arith.constant 0 : index
    %c0_8 = arith.constant 0 : index
    %11 = vector.load %arg7[%c0_7, %c0_8] : memref<1x32xf32, #tpu.memory_space<vmem>>, vector<1x32xf32>
    %cst_9 = arith.constant dense<0.000000e+00> : vector<16xf32>
    %12 = vector.multi_reduction <add>, %9, %cst_9 [1] : vector<16x32xf32> to vector<16xf32>
    %13 = vector.shape_cast %12 : vector<16xf32> to vector<16x1xf32>
    %cst_10 = arith.constant 3.200000e+01 : f32
    %14 = vector.broadcast %cst_10 : f32 to vector<16x1xf32>
    %15 = arith.divf %13, %14 : vector<16x1xf32>
    %16 = vector.broadcast %15 : vector<16x1xf32> to vector<16x32xf32>
    %17 = arith.subf %9, %16 : vector<16x32xf32>
    %18 = arith.mulf %17, %17 : vector<16x32xf32>
    %cst_11 = arith.constant dense<0.000000e+00> : vector<16xf32>
    %19 = vector.multi_reduction <add>, %18, %cst_11 [1] : vector<16x32xf32> to vector<16xf32>
    %20 = vector.shape_cast %19 : vector<16xf32> to vector<16x1xf32>
    %cst_12 = arith.constant 3.200000e+01 : f32
    %21 = vector.broadcast %cst_12 : f32 to vector<16x1xf32>
    %22 = arith.divf %20, %21 : vector<16x1xf32>
    %23 = vector.broadcast %15 : vector<16x1xf32> to vector<16x32xf32>
    %24 = arith.subf %9, %23 : vector<16x32xf32>
    %cst_13 = arith.constant 9.99999996E-13 : f32
    %25 = vector.broadcast %cst_13 : f32 to vector<16x1xf32>
    %26 = arith.addf %22, %25 : vector<16x1xf32>
    %27 = math.rsqrt %26 : vector<16x1xf32>
    %28 = vector.broadcast %27 : vector<16x1xf32> to vector<16x32xf32>
    %29 = arith.mulf %24, %28 : vector<16x32xf32>
    %30 = vector.broadcast %10 : vector<1x32xf32> to vector<16x32xf32>
    %31 = arith.mulf %29, %30 : vector<16x32xf32>
    %32 = vector.broadcast %11 : vector<1x32xf32> to vector<16x32xf32>
    %33 = arith.addf %31, %32 : vector<16x32xf32>
    %c0_14 = arith.constant 0 : index
    %c0_15 = arith.constant 0 : index
    %34 = vector.load %arg8[%c0_14, %c0_15] : memref<32x96xf32, #tpu.memory_space<vmem>>, vector<32x96xf32>
    %cst_16 = arith.constant dense<0.000000e+00> : vector<16x96xf32>
    %35 = tpu.matmul %33, %34, %cst_16 {dimension_numbers = #tpu.dot_dimension_numbers<[1], [0], [0], [1], [0, 0, 1, 1], [], []>} : vector<16x32xf32>, vector<32x96xf32>, vector<16x96xf32> -> vector<16x96xf32>
    %c0_17 = arith.constant 0 : index
    %c0_18 = arith.constant 0 : index
    %36 = vector.load %arg9[%c0_17, %c0_18] : memref<1x96xf32, #tpu.memory_space<vmem>>, vector<1x96xf32>
    %37 = vector.broadcast %36 : vector<1x96xf32> to vector<16x96xf32>
    %38 = arith.addf %35, %37 : vector<16x96xf32>
    %c0_19 = arith.constant 0 : index
    %c0_20 = arith.constant 0 : index
    %39 = vector.load %arg2[%c0_19, %c0_20] : memref<2x8xf32, #tpu.memory_space<vmem>>, vector<2x8xf32>
    %40 = vector.extract_strided_slice %39 {offsets = [0, 0], sizes = [1, 8], strides = [1, 1]} : vector<2x8xf32> to vector<1x8xf32>
    %41 = vector.extract_strided_slice %38 {offsets = [0, 0], sizes = [8, 16], strides = [1, 1]} : vector<16x96xf32> to vector<8x16xf32>
    %42 = vector.extract_strided_slice %38 {offsets = [0, 32], sizes = [8, 16], strides = [1, 1]} : vector<16x96xf32> to vector<8x16xf32>
    %43 = vector.extract_strided_slice %38 {offsets = [0, 64], sizes = [8, 16], strides = [1, 1]} : vector<16x96xf32> to vector<8x16xf32>
    %cst_21 = arith.constant dense<0.000000e+00> : vector<8x8xf32>
    %44 = tpu.matmul %41, %42, %cst_21 {dimension_numbers = #tpu.dot_dimension_numbers<[1], [1], [0], [0], [0, 0, 1, 0], [], []>} : vector<8x16xf32>, vector<8x16xf32>, vector<8x8xf32> -> vector<8x8xf32>
    %cst_22 = arith.constant 2.500000e-01 : f32
    %45 = vector.broadcast %cst_22 : f32 to vector<8x8xf32>
    %46 = arith.mulf %44, %45 : vector<8x8xf32>
    %cst_23 = arith.constant 1.000000e+00 : f32
    %47 = vector.broadcast %cst_23 : f32 to vector<1x8xf32>
    %48 = arith.subf %47, %40 : vector<1x8xf32>
    %cst_24 = arith.constant -1.000000e+09 : f32
    %49 = vector.broadcast %cst_24 : f32 to vector<1x8xf32>
    %50 = arith.mulf %48, %49 : vector<1x8xf32>
    %51 = vector.broadcast %50 : vector<1x8xf32> to vector<8x8xf32>
    %52 = arith.addf %46, %51 : vector<8x8xf32>
    %cst_25 = arith.constant dense<0xFF800000> : vector<8xf32>
    %53 = vector.multi_reduction <maximumf>, %52, %cst_25 [1] : vector<8x8xf32> to vector<8xf32>
    %54 = vector.shape_cast %53 : vector<8xf32> to vector<8x1xf32>
    %55 = vector.broadcast %54 : vector<8x1xf32> to vector<8x8xf32>
    %56 = arith.subf %52, %55 : vector<8x8xf32>
    %57 = math.exp %56 : vector<8x8xf32>
    %cst_26 = arith.constant dense<0.000000e+00> : vector<8xf32>
    %58 = vector.multi_reduction <add>, %57, %cst_26 [1] : vector<8x8xf32> to vector<8xf32>
    %59 = vector.shape_cast %58 : vector<8xf32> to vector<8x1xf32>
    %60 = tpu.reciprocal %59 {approx = true} : vector<8x1xf32> -> vector<8x1xf32>
    %61 = vector.broadcast %60 : vector<8x1xf32> to vector<8x8xf32>
    %62 = arith.mulf %57, %61 : vector<8x8xf32>
    %cst_27 = arith.constant dense<0.000000e+00> : vector<8x16xf32>
    %63 = tpu.matmul %62, %43, %cst_27 {dimension_numbers = #tpu.dot_dimension_numbers<[1], [0], [0], [1], [0, 0, 1, 1], [], []>} : vector<8x8xf32>, vector<8x16xf32>, vector<8x16xf32> -> vector<8x16xf32>
    %64 = vector.extract_strided_slice %38 {offsets = [0, 16], sizes = [8, 16], strides = [1, 1]} : vector<16x96xf32> to vector<8x16xf32>
    %65 = vector.extract_strided_slice %38 {offsets = [0, 48], sizes = [8, 16], strides = [1, 1]} : vector<16x96xf32> to vector<8x16xf32>
    %66 = vector.extract_strided_slice %38 {offsets = [0, 80], sizes = [8, 16], strides = [1, 1]} : vector<16x96xf32> to vector<8x16xf32>
    %cst_28 = arith.constant dense<0.000000e+00> : vector<8x8xf32>
    %67 = tpu.matmul %64, %65, %cst_28 {dimension_numbers = #tpu.dot_dimension_numbers<[1], [1], [0], [0], [0, 0, 1, 0], [], []>} : vector<8x16xf32>, vector<8x16xf32>, vector<8x8xf32> -> vector<8x8xf32>
    %cst_29 = arith.constant 2.500000e-01 : f32
    %68 = vector.broadcast %cst_29 : f32 to vector<8x8xf32>
    %69 = arith.mulf %67, %68 : vector<8x8xf32>
    %cst_30 = arith.constant 1.000000e+00 : f32
    %70 = vector.broadcast %cst_30 : f32 to vector<1x8xf32>
    %71 = arith.subf %70, %40 : vector<1x8xf32>
    %cst_31 = arith.constant -1.000000e+09 : f32
    %72 = vector.broadcast %cst_31 : f32 to vector<1x8xf32>
    %73 = arith.mulf %71, %72 : vector<1x8xf32>
    %74 = vector.broadcast %73 : vector<1x8xf32> to vector<8x8xf32>
    %75 = arith.addf %69, %74 : vector<8x8xf32>
    %cst_32 = arith.constant dense<0xFF800000> : vector<8xf32>
    %76 = vector.multi_reduction <maximumf>, %75, %cst_32 [1] : vector<8x8xf32> to vector<8xf32>
    %77 = vector.shape_cast %76 : vector<8xf32> to vector<8x1xf32>
    %78 = vector.broadcast %77 : vector<8x1xf32> to vector<8x8xf32>
    %79 = arith.subf %75, %78 : vector<8x8xf32>
    %80 = math.exp %79 : vector<8x8xf32>
    %cst_33 = arith.constant dense<0.000000e+00> : vector<8xf32>
    %81 = vector.multi_reduction <add>, %80, %cst_33 [1] : vector<8x8xf32> to vector<8xf32>
    %82 = vector.shape_cast %81 : vector<8xf32> to vector<8x1xf32>
    %83 = tpu.reciprocal %82 {approx = true} : vector<8x1xf32> -> vector<8x1xf32>
    %84 = vector.broadcast %83 : vector<8x1xf32> to vector<8x8xf32>
    %85 = arith.mulf %80, %84 : vector<8x8xf32>
    %cst_34 = arith.constant dense<0.000000e+00> : vector<8x16xf32>
    %86 = tpu.matmul %85, %66, %cst_34 {dimension_numbers = #tpu.dot_dimension_numbers<[1], [0], [0], [1], [0, 0, 1, 1], [], []>} : vector<8x8xf32>, vector<8x16xf32>, vector<8x16xf32> -> vector<8x16xf32>
    %87 = tpu.concatenate %63, %86 in 1 : vector<8x16xf32>, vector<8x16xf32> -> vector<8x32xf32>
    %88 = vector.extract_strided_slice %39 {offsets = [1, 0], sizes = [1, 8], strides = [1, 1]} : vector<2x8xf32> to vector<1x8xf32>
    %89 = vector.extract_strided_slice %38 {offsets = [8, 0], sizes = [8, 16], strides = [1, 1]} : vector<16x96xf32> to vector<8x16xf32>
    %90 = vector.extract_strided_slice %38 {offsets = [8, 32], sizes = [8, 16], strides = [1, 1]} : vector<16x96xf32> to vector<8x16xf32>
    %91 = vector.extract_strided_slice %38 {offsets = [8, 64], sizes = [8, 16], strides = [1, 1]} : vector<16x96xf32> to vector<8x16xf32>
    %cst_35 = arith.constant dense<0.000000e+00> : vector<8x8xf32>
    %92 = tpu.matmul %89, %90, %cst_35 {dimension_numbers = #tpu.dot_dimension_numbers<[1], [1], [0], [0], [0, 0, 1, 0], [], []>} : vector<8x16xf32>, vector<8x16xf32>, vector<8x8xf32> -> vector<8x8xf32>
    %cst_36 = arith.constant 2.500000e-01 : f32
    %93 = vector.broadcast %cst_36 : f32 to vector<8x8xf32>
    %94 = arith.mulf %92, %93 : vector<8x8xf32>
    %cst_37 = arith.constant 1.000000e+00 : f32
    %95 = vector.broadcast %cst_37 : f32 to vector<1x8xf32>
    %96 = arith.subf %95, %88 : vector<1x8xf32>
    %cst_38 = arith.constant -1.000000e+09 : f32
    %97 = vector.broadcast %cst_38 : f32 to vector<1x8xf32>
    %98 = arith.mulf %96, %97 : vector<1x8xf32>
    %99 = vector.broadcast %98 : vector<1x8xf32> to vector<8x8xf32>
    %100 = arith.addf %94, %99 : vector<8x8xf32>
    %cst_39 = arith.constant dense<0xFF800000> : vector<8xf32>
    %101 = vector.multi_reduction <maximumf>, %100, %cst_39 [1] : vector<8x8xf32> to vector<8xf32>
    %102 = vector.shape_cast %101 : vector<8xf32> to vector<8x1xf32>
    %103 = vector.broadcast %102 : vector<8x1xf32> to vector<8x8xf32>
    %104 = arith.subf %100, %103 : vector<8x8xf32>
    %105 = math.exp %104 : vector<8x8xf32>
    %cst_40 = arith.constant dense<0.000000e+00> : vector<8xf32>
    %106 = vector.multi_reduction <add>, %105, %cst_40 [1] : vector<8x8xf32> to vector<8xf32>
    %107 = vector.shape_cast %106 : vector<8xf32> to vector<8x1xf32>
    %108 = tpu.reciprocal %107 {approx = true} : vector<8x1xf32> -> vector<8x1xf32>
    %109 = vector.broadcast %108 : vector<8x1xf32> to vector<8x8xf32>
    %110 = arith.mulf %105, %109 : vector<8x8xf32>
    %cst_41 = arith.constant dense<0.000000e+00> : vector<8x16xf32>
    %111 = tpu.matmul %110, %91, %cst_41 {dimension_numbers = #tpu.dot_dimension_numbers<[1], [0], [0], [1], [0, 0, 1, 1], [], []>} : vector<8x8xf32>, vector<8x16xf32>, vector<8x16xf32> -> vector<8x16xf32>
    %112 = vector.extract_strided_slice %38 {offsets = [8, 16], sizes = [8, 16], strides = [1, 1]} : vector<16x96xf32> to vector<8x16xf32>
    %113 = vector.extract_strided_slice %38 {offsets = [8, 48], sizes = [8, 16], strides = [1, 1]} : vector<16x96xf32> to vector<8x16xf32>
    %114 = vector.extract_strided_slice %38 {offsets = [8, 80], sizes = [8, 16], strides = [1, 1]} : vector<16x96xf32> to vector<8x16xf32>
    %cst_42 = arith.constant dense<0.000000e+00> : vector<8x8xf32>
    %115 = tpu.matmul %112, %113, %cst_42 {dimension_numbers = #tpu.dot_dimension_numbers<[1], [1], [0], [0], [0, 0, 1, 0], [], []>} : vector<8x16xf32>, vector<8x16xf32>, vector<8x8xf32> -> vector<8x8xf32>
    %cst_43 = arith.constant 2.500000e-01 : f32
    %116 = vector.broadcast %cst_43 : f32 to vector<8x8xf32>
    %117 = arith.mulf %115, %116 : vector<8x8xf32>
    %cst_44 = arith.constant 1.000000e+00 : f32
    %118 = vector.broadcast %cst_44 : f32 to vector<1x8xf32>
    %119 = arith.subf %118, %88 : vector<1x8xf32>
    %cst_45 = arith.constant -1.000000e+09 : f32
    %120 = vector.broadcast %cst_45 : f32 to vector<1x8xf32>
    %121 = arith.mulf %119, %120 : vector<1x8xf32>
    %122 = vector.broadcast %121 : vector<1x8xf32> to vector<8x8xf32>
    %123 = arith.addf %117, %122 : vector<8x8xf32>
    %cst_46 = arith.constant dense<0xFF800000> : vector<8xf32>
    %124 = vector.multi_reduction <maximumf>, %123, %cst_46 [1] : vector<8x8xf32> to vector<8xf32>
    %125 = vector.shape_cast %124 : vector<8xf32> to vector<8x1xf32>
    %126 = vector.broadcast %125 : vector<8x1xf32> to vector<8x8xf32>
    %127 = arith.subf %123, %126 : vector<8x8xf32>
    %128 = math.exp %127 : vector<8x8xf32>
    %cst_47 = arith.constant dense<0.000000e+00> : vector<8xf32>
    %129 = vector.multi_reduction <add>, %128, %cst_47 [1] : vector<8x8xf32> to vector<8xf32>
    %130 = vector.shape_cast %129 : vector<8xf32> to vector<8x1xf32>
    %131 = tpu.reciprocal %130 {approx = true} : vector<8x1xf32> -> vector<8x1xf32>
    %132 = vector.broadcast %131 : vector<8x1xf32> to vector<8x8xf32>
    %133 = arith.mulf %128, %132 : vector<8x8xf32>
    %cst_48 = arith.constant dense<0.000000e+00> : vector<8x16xf32>
    %134 = tpu.matmul %133, %114, %cst_48 {dimension_numbers = #tpu.dot_dimension_numbers<[1], [0], [0], [1], [0, 0, 1, 1], [], []>} : vector<8x8xf32>, vector<8x16xf32>, vector<8x16xf32> -> vector<8x16xf32>
    %135 = tpu.concatenate %111, %134 in 1 : vector<8x16xf32>, vector<8x16xf32> -> vector<8x32xf32>
    %136 = tpu.concatenate %87, %135 in 0 : vector<8x32xf32>, vector<8x32xf32> -> vector<16x32xf32>
    %c0_49 = arith.constant 0 : index
    %c0_50 = arith.constant 0 : index
    %137 = vector.load %arg10[%c0_49, %c0_50] : memref<32x32xf32, #tpu.memory_space<vmem>>, vector<32x32xf32>
    %cst_51 = arith.constant dense<0.000000e+00> : vector<16x32xf32>
    %138 = tpu.matmul %136, %137, %cst_51 {dimension_numbers = #tpu.dot_dimension_numbers<[1], [0], [0], [1], [0, 0, 1, 1], [], []>} : vector<16x32xf32>, vector<32x32xf32>, vector<16x32xf32> -> vector<16x32xf32>
    %c0_52 = arith.constant 0 : index
    %c0_53 = arith.constant 0 : index
    %139 = vector.load %arg11[%c0_52, %c0_53] : memref<1x32xf32, #tpu.memory_space<vmem>>, vector<1x32xf32>
    %140 = vector.broadcast %139 : vector<1x32xf32> to vector<16x32xf32>
    %141 = arith.addf %138, %140 : vector<16x32xf32>
    %142 = arith.addf %141, %33 : vector<16x32xf32>
    %c0_54 = arith.constant 0 : index
    %c0_55 = arith.constant 0 : index
    %143 = vector.load %arg12[%c0_54, %c0_55] : memref<1x32xf32, #tpu.memory_space<vmem>>, vector<1x32xf32>
    %c0_56 = arith.constant 0 : index
    %c0_57 = arith.constant 0 : index
    %144 = vector.load %arg13[%c0_56, %c0_57] : memref<1x32xf32, #tpu.memory_space<vmem>>, vector<1x32xf32>
    %cst_58 = arith.constant dense<0.000000e+00> : vector<16xf32>
    %145 = vector.multi_reduction <add>, %142, %cst_58 [1] : vector<16x32xf32> to vector<16xf32>
    %146 = vector.shape_cast %145 : vector<16xf32> to vector<16x1xf32>
    %cst_59 = arith.constant 3.200000e+01 : f32
    %147 = vector.broadcast %cst_59 : f32 to vector<16x1xf32>
    %148 = arith.divf %146, %147 : vector<16x1xf32>
    %149 = vector.broadcast %148 : vector<16x1xf32> to vector<16x32xf32>
    %150 = arith.subf %142, %149 : vector<16x32xf32>
    %151 = arith.mulf %150, %150 : vector<16x32xf32>
    %cst_60 = arith.constant dense<0.000000e+00> : vector<16xf32>
    %152 = vector.multi_reduction <add>, %151, %cst_60 [1] : vector<16x32xf32> to vector<16xf32>
    %153 = vector.shape_cast %152 : vector<16xf32> to vector<16x1xf32>
    %cst_61 = arith.constant 3.200000e+01 : f32
    %154 = vector.broadcast %cst_61 : f32 to vector<16x1xf32>
    %155 = arith.divf %153, %154 : vector<16x1xf32>
    %156 = vector.broadcast %148 : vector<16x1xf32> to vector<16x32xf32>
    %157 = arith.subf %142, %156 : vector<16x32xf32>
    %cst_62 = arith.constant 9.99999996E-13 : f32
    %158 = vector.broadcast %cst_62 : f32 to vector<16x1xf32>
    %159 = arith.addf %155, %158 : vector<16x1xf32>
    %160 = math.rsqrt %159 : vector<16x1xf32>
    %161 = vector.broadcast %160 : vector<16x1xf32> to vector<16x32xf32>
    %162 = arith.mulf %157, %161 : vector<16x32xf32>
    %163 = vector.broadcast %143 : vector<1x32xf32> to vector<16x32xf32>
    %164 = arith.mulf %162, %163 : vector<16x32xf32>
    %165 = vector.broadcast %144 : vector<1x32xf32> to vector<16x32xf32>
    %166 = arith.addf %164, %165 : vector<16x32xf32>
    %c0_63 = arith.constant 0 : index
    %c0_64 = arith.constant 0 : index
    %167 = vector.load %arg14[%c0_63, %c0_64] : memref<32x64xf32, #tpu.memory_space<vmem>>, vector<32x64xf32>
    %cst_65 = arith.constant dense<0.000000e+00> : vector<16x64xf32>
    %168 = tpu.matmul %166, %167, %cst_65 {dimension_numbers = #tpu.dot_dimension_numbers<[1], [0], [0], [1], [0, 0, 1, 1], [], []>} : vector<16x32xf32>, vector<32x64xf32>, vector<16x64xf32> -> vector<16x64xf32>
    %c0_66 = arith.constant 0 : index
    %c0_67 = arith.constant 0 : index
    %169 = vector.load %arg15[%c0_66, %c0_67] : memref<1x64xf32, #tpu.memory_space<vmem>>, vector<1x64xf32>
    %170 = vector.broadcast %169 : vector<1x64xf32> to vector<16x64xf32>
    %171 = arith.addf %168, %170 : vector<16x64xf32>
    %cst_68 = arith.constant 5.000000e-01 : f32
    %172 = vector.broadcast %cst_68 : f32 to vector<16x64xf32>
    %173 = arith.mulf %172, %171 : vector<16x64xf32>
    %cst_69 = arith.constant 4.471500e-02 : f32
    %174 = vector.broadcast %cst_69 : f32 to vector<16x64xf32>
    %175 = arith.mulf %174, %171 : vector<16x64xf32>
    %176 = arith.mulf %175, %171 : vector<16x64xf32>
    %177 = arith.mulf %176, %171 : vector<16x64xf32>
    %178 = arith.addf %171, %177 : vector<16x64xf32>
    %cst_70 = arith.constant 0.797884583 : f32
    %179 = vector.broadcast %cst_70 : f32 to vector<16x64xf32>
    %180 = arith.mulf %179, %178 : vector<16x64xf32>
    %181 = math.tanh %180 : vector<16x64xf32>
    %cst_71 = arith.constant 1.000000e+00 : f32
    %182 = vector.broadcast %cst_71 : f32 to vector<16x64xf32>
    %183 = arith.addf %182, %181 : vector<16x64xf32>
    %184 = arith.mulf %173, %183 : vector<16x64xf32>
    %c0_72 = arith.constant 0 : index
    %c0_73 = arith.constant 0 : index
    %185 = vector.load %arg16[%c0_72, %c0_73] : memref<64x32xf32, #tpu.memory_space<vmem>>, vector<64x32xf32>
    %cst_74 = arith.constant dense<0.000000e+00> : vector<16x32xf32>
    %186 = tpu.matmul %184, %185, %cst_74 {dimension_numbers = #tpu.dot_dimension_numbers<[1], [0], [0], [1], [0, 0, 1, 1], [], []>} : vector<16x64xf32>, vector<64x32xf32>, vector<16x32xf32> -> vector<16x32xf32>
    %c0_75 = arith.constant 0 : index
    %c0_76 = arith.constant 0 : index
    %187 = vector.load %arg17[%c0_75, %c0_76] : memref<1x32xf32, #tpu.memory_space<vmem>>, vector<1x32xf32>
    %188 = vector.broadcast %187 : vector<1x32xf32> to vector<16x32xf32>
    %189 = arith.addf %186, %188 : vector<16x32xf32>
    %190 = arith.addf %189, %166 : vector<16x32xf32>
    %c0_77 = arith.constant 0 : index
    %c0_78 = arith.constant 0 : index
    %191 = vector.load %arg18[%c0_77, %c0_78] : memref<1x32xf32, #tpu.memory_space<vmem>>, vector<1x32xf32>
    %c0_79 = arith.constant 0 : index
    %c0_80 = arith.constant 0 : index
    %192 = vector.load %arg19[%c0_79, %c0_80] : memref<1x32xf32, #tpu.memory_space<vmem>>, vector<1x32xf32>
    %cst_81 = arith.constant dense<0.000000e+00> : vector<16xf32>
    %193 = vector.multi_reduction <add>, %190, %cst_81 [1] : vector<16x32xf32> to vector<16xf32>
    %194 = vector.shape_cast %193 : vector<16xf32> to vector<16x1xf32>
    %cst_82 = arith.constant 3.200000e+01 : f32
    %195 = vector.broadcast %cst_82 : f32 to vector<16x1xf32>
    %196 = arith.divf %194, %195 : vector<16x1xf32>
    %197 = vector.broadcast %196 : vector<16x1xf32> to vector<16x32xf32>
    %198 = arith.subf %190, %197 : vector<16x32xf32>
    %199 = arith.mulf %198, %198 : vector<16x32xf32>
    %cst_83 = arith.constant dense<0.000000e+00> : vector<16xf32>
    %200 = vector.multi_reduction <add>, %199, %cst_83 [1] : vector<16x32xf32> to vector<16xf32>
    %201 = vector.shape_cast %200 : vector<16xf32> to vector<16x1xf32>
    %cst_84 = arith.constant 3.200000e+01 : f32
    %202 = vector.broadcast %cst_84 : f32 to vector<16x1xf32>
    %203 = arith.divf %201, %202 : vector<16x1xf32>
    %204 = vector.broadcast %196 : vector<16x1xf32> to vector<16x32xf32>
    %205 = arith.subf %190, %204 : vector<16x32xf32>
    %cst_85 = arith.constant 9.99999996E-13 : f32
    %206 = vector.broadcast %cst_85 : f32 to vector<16x1xf32>
    %207 = arith.addf %203, %206 : vector<16x1xf32>
    %208 = math.rsqrt %207 : vector<16x1xf32>
    %209 = vector.broadcast %208 : vector<16x1xf32> to vector<16x32xf32>
    %210 = arith.mulf %205, %209 : vector<16x32xf32>
    %211 = vector.broadcast %191 : vector<1x32xf32> to vector<16x32xf32>
    %212 = arith.mulf %210, %211 : vector<16x32xf32>
    %213 = vector.broadcast %192 : vector<1x32xf32> to vector<16x32xf32>
    %214 = arith.addf %212, %213 : vector<16x32xf32>
    %215 = vector.extract_strided_slice %214 {offsets = [0, 0], sizes = [1, 32], strides = [1, 1]} : vector<16x32xf32> to vector<1x32xf32>
    %216 = vector.extract_strided_slice %214 {offsets = [8, 0], sizes = [1, 32], strides = [1, 1]} : vector<16x32xf32> to vector<1x32xf32>
    %217 = tpu.concatenate %215, %216 in 0 : vector<1x32xf32>, vector<1x32xf32> -> vector<2x32xf32>
    %c0_86 = arith.constant 0 : index
    %c0_87 = arith.constant 0 : index
    %218 = vector.load %arg20[%c0_86, %c0_87] : memref<32x32xf32, #tpu.memory_space<vmem>>, vector<32x32xf32>
    %cst_88 = arith.constant dense<0.000000e+00> : vector<2x32xf32>
    %219 = tpu.matmul %217, %218, %cst_88 {dimension_numbers = #tpu.dot_dimension_numbers<[1], [0], [0], [1], [0, 0, 1, 1], [], []>} : vector<2x32xf32>, vector<32x32xf32>, vector<2x32xf32> -> vector<2x32xf32>
    %c0_89 = arith.constant 0 : index
    %c0_90 = arith.constant 0 : index
    %220 = vector.load %arg21[%c0_89, %c0_90] : memref<1x32xf32, #tpu.memory_space<vmem>>, vector<1x32xf32>
    %221 = vector.broadcast %220 : vector<1x32xf32> to vector<2x32xf32>
    %222 = arith.addf %219, %221 : vector<2x32xf32>
    %223 = math.tanh %222 : vector<2x32xf32>
    %c0_91 = arith.constant 0 : index
    %c0_92 = arith.constant 0 : index
    %224 = vector.load %arg22[%c0_91, %c0_92] : memref<32x4xf32, #tpu.memory_space<vmem>>, vector<32x4xf32>
    %cst_93 = arith.constant dense<0.000000e+00> : vector<2x4xf32>
    %225 = tpu.matmul %223, %224, %cst_93 {dimension_numbers = #tpu.dot_dimension_numbers<[1], [0], [0], [1], [0, 0, 1, 1], [], []>} : vector<2x32xf32>, vector<32x4xf32>, vector<2x4xf32> -> vector<2x4xf32>
    %c0_94 = arith.constant 0 : index
    %c0_95 = arith.constant 0 : index
    %226 = vector.load %arg23[%c0_94, %c0_95] : memref<1x4xf32, #tpu.memory_space<vmem>>, vector<1x4xf32>
    %227 = vector.broadcast %226 : vector<1x4xf32> to vector<2x4xf32>
    %228 = arith.addf %225, %227 : vector<2x4xf32>
    %c0_96 = arith.constant 0 : index
    %c0_97 = arith.constant 0 : index
    %229 = vector.load %arg24[%c0_96, %c0_97] : memref<2x4xf32, #tpu.memory_space<vmem>>, vector<2x4xf32>
    tpu.vector_store %arg24[%c0_96, %c0_97], %228 {strides = array<i32>} : memref<2x4xf32, #tpu.memory_space<vmem>>, vector<2x4xf32>,
    %c0_98 = arith.constant 0 : index
    %c0_99 = arith.constant 0 : index
    %230 = vector.load %arg3[%c0_98, %c0_99] : memref<2x1xi32, #tpu.memory_space<vmem>>, vector<2x1xi32>
    %231 = tpu.iota {dimensions = array<i32: 1>} : vector<2x4xi32>
    %232 = vector.broadcast %230 : vector<2x1xi32> to vector<2x4xi32>
    %233 = arith.cmpi eq, %232, %231 : vector<2x4xi32>
    %234 = arith.extui %233 : vector<2x4xi1> to vector<2x4xi32>
    %235 = arith.sitofp %234 : vector<2x4xi32> to vector<2x4xf32>
    %cst_100 = arith.constant dense<0xFF800000> : vector<2xf32>
    %236 = vector.multi_reduction <maximumf>, %228, %cst_100 [1] : vector<2x4xf32> to vector<2xf32>
    %237 = vector.shape_cast %236 : vector<2xf32> to vector<2x1xf32>
    %238 = vector.broadcast %237 : vector<2x1xf32> to vector<2x4xf32>
    %239 = arith.subf %228, %238 : vector<2x4xf32>
    %240 = math.exp %239 : vector<2x4xf32>
    %cst_101 = arith.constant dense<0.000000e+00> : vector<2xf32>
    %241 = vector.multi_reduction <add>, %240, %cst_101 [1] : vector<2x4xf32> to vector<2xf32>
    %242 = vector.shape_cast %241 : vector<2xf32> to vector<2x1xf32>
    %243 = math.log %242 : vector<2x1xf32>
    %244 = vector.broadcast %243 : vector<2x1xf32> to vector<2x4xf32>
    %245 = arith.subf %239, %244 : vector<2x4xf32>
    %246 = arith.mulf %235, %245 : vector<2x4xf32>
    %cst_102 = arith.constant dense<0.000000e+00> : vector<2xf32>
    %247 = vector.multi_reduction <add>, %246, %cst_102 [1] : vector<2x4xf32> to vector<2xf32>
    %248 = vector.shape_cast %247 : vector<2xf32> to vector<2x1xf32>
    %cst_103 = arith.constant 0.000000e+00 : f32
    %249 = vector.broadcast %cst_103 : f32 to vector<2x1xf32>
    %250 = arith.subf %249, %248 : vector<2x1xf32>
    %cst_104 = arith.constant dense<0.000000e+00> : vector<1xf32>
    %251 = vector.multi_reduction <add>, %250, %cst_104 [0] : vector<2x1xf32> to vector<1xf32>
    %252 = vector.shape_cast %251 : vector<1xf32> to vector<1x1xf32>
    %cst_105 = arith.constant 2.000000e+00 : f32
    %253 = vector.broadcast %cst_105 : f32 to vector<1x1xf32>
    %254 = arith.divf %252, %253 : vector<1x1xf32>
    %c0_106 = arith.constant 0 : index
    %c0_107 = arith.constant 0 : index
    %255 = vector.load %arg25[%c0_106, %c0_107] : memref<1x1xf32, #tpu.memory_space<vmem>>, vector<1x1xf32>
    tpu.vector_store %arg25[%c0_106, %c0_107], %254 {strides = array<i32>} : memref<1x1xf32, #tpu.memory_space<vmem>>, vector<1x1xf32>,
    return
  }
  func.func @transform_0(%arg0: i32) -> (i32, i32) {
    %c0_i32 = arith.constant 0 : i32
    %c0_i32_0 = arith.constant 0 : i32
    %c0_i32_1 = arith.constant 0 : i32
    return %c0_i32, %c0_i32_0 : i32, i32
  }
  func.func @transform_1(%arg0: i32) -> (i32, i32) {
    %c0_i32 = arith.constant 0 : i32
    %c0_i32_0 = arith.constant 0 : i32
    %c0_i32_1 = arith.constant 0 : i32
    return %c0_i32, %c0_i32_0 : i32, i32
  }
  func.func @transform_2(%arg0: i32) -> (i32, i32) {
    %c0_i32 = arith.constant 0 : i32
    %c0_i32_0 = arith.constant 0 : i32
    %c0_i32_1 = arith.constant 0 : i32
    return %c0_i32, %c0_i32_0 : i32, i32
  }
  func.func @transform_3(%arg0: i32) -> (i32, i32) {
    %c0_i32 = arith.constant 0 : i32
    %c0_i32_0 = arith.constant 0 : i32
    %c0_i32_1 = arith.constant 0 : i32
    return %c0_i32, %c0_i32_0 : i32, i32
  }
  func.func @transform_4(%arg0: i32) -> (i32, i32) {
    %c0_i32 = arith.constant 0 : i32
    %c0_i32_0 = arith.constant 0 : i32
    %c0_i32_1 = arith.constant 0 : i32
    return %c0_i32, %c0_i32_0 : i32, i32
  }
  func.func @transform_5(%arg0: i32) -> (i32, i32) {
    %c0_i32 = arith.constant 0 : i32
    %c0_i32_0 = arith.constant 0 : i32
    %c0_i32_1 = arith.constant 0 : i32
    return %c0_i32, %c0_i32_0 : i32, i32
  }
  func.func @transform_6(%arg0: i32) -> (i32, i32) {
    %c0_i32 = arith.constant 0 : i32
    %c0_i32_0 = arith.constant 0 : i32
    %c0_i32_1 = arith.constant 0 : i32
    return %c0_i32, %c0_i32_0 : i32, i32
  }
  func.func @transform_7(%arg0: i32) -> (i32, i32) {
    %c0_i32 = arith.constant 0 : i32
    %c0_i32_0 = arith.constant 0 : i32
    %c0_i32_1 = arith.constant 0 : i32
    return %c0_i32, %c0_i32_0 : i32, i32
  }
  func.func @transform_8(%arg0: i32) -> (i32, i32) {
    %c0_i32 = arith.constant 0 : i32
    %c0_i32_0 = arith.constant 0 : i32
    %c0_i32_1 = arith.constant 0 : i32
    return %c0_i32, %c0_i32_0 : i32, i32
  }
  func.func @transform_9(%arg0: i32) -> (i32, i32) {
    %c0_i32 = arith.constant 0 : i32
    %c0_i32_0 = arith.constant 0 : i32
    %c0_i32_1 = arith.constant 0 : i32
    return %c0_i32, %c0_i32_0 : i32, i32
  }
  func.func @transform_10(%arg0: i32) -> (i32, i32) {
    %c0_i32 = arith.constant 0 : i32
    %c0_i32_0 = arith.constant 0 : i32
    %c0_i32_1 = arith.constant 0 : i32
    return %c0_i32, %c0_i32_0 : i32, i32
  }
  func.func @transform_11(%arg0: i32) -> (i32, i32) {
    %c0_i32 = arith.constant 0 : i32
    %c0_i32_0 = arith.constant 0 : i32
    %c0_i32_1 = arith.constant 0 : i32
    return %c0_i32, %c0_i32_0 : i32, i32
  }
  func.func @transform_12(%arg0: i32) -> (i32, i32) {
    %c0_i32 = arith.constant 0 : i32
    %c0_i32_0 = arith.constant 0 : i32
    %c0_i32_1 = arith.constant 0 : i32
    return %c0_i32, %c0_i32_0 : i32, i32
  }
  func.func @transform_13(%arg0: i32) -> (i32, i32) {
    %c0_i32 = arith.constant 0 : i32
    %c0_i32_0 = arith.constant 0 : i32
    %c0_i32_1 = arith.constant 0 : i32
    return %c0_i32, %c0_i32_0 : i32, i32
  }
  func.func @transform_14(%arg0: i32) -> (i32, i32) {
    %c0_i32 = arith.constant 0 : i32
    %c0_i32_0 = arith.constant 0 : i32
    %c0_i32_1 = arith.constant 0 : i32
    return %c0_i32, %c0_i32_0 : i32, i32
  }
  func.func @transform_15(%arg0: i32) -> (i32, i32) {
    %c0_i32 = arith.constant 0 : i32
    %c0_i32_0 = arith.constant 0 : i32
    %c0_i32_1 = arith.constant 0 : i32
    return %c0_i32, %c0_i32_0 : i32, i32
  }
  func.func @transform_16(%arg0: i32) -> (i32, i32) {
    %c0_i32 = arith.constant 0 : i32
    %c0_i32_0 = arith.constant 0 : i32
    %c0_i32_1 = arith.constant 0 : i32
    return %c0_i32, %c0_i32_0 : i32, i32
  }
  func.func @transform_17(%arg0: i32) -> (i32, i32) {
    %c0_i32 = arith.constant 0 : i32
    %c0_i32_0 = arith.constant 0 : i32
    %c0_i32_1 = arith.constant 0 : i32
    return %c0_i32, %c0_i32_0 : i32, i32
  }
  func.func @transform_18(%arg0: i32) -> (i32, i32) {
    %c0_i32 = arith.constant 0 : i32
    %c0_i32_0 = arith.constant 0 : i32
    %c0_i32_1 = arith.constant 0 : i32
    return %c0_i32, %c0_i32_0 : i32, i32
  }
  func.func @transform_19(%arg0: i32) -> (i32, i32) {
    %c0_i32 = arith.constant 0 : i32
    %c0_i32_0 = arith.constant 0 : i32
    %c0_i32_1 = arith.constant 0 : i32
    return %c0_i32, %c0_i32_0 : i32, i32
  }
  func.func @transform_20(%arg0: i32) -> (i32, i32) {
    %c0_i32 = arith.constant 0 : i32
    %c0_i32_0 = arith.constant 0 : i32
    %c0_i32_1 = arith.constant 0 : i32
    return %c0_i32, %c0_i32_0 : i32, i32
  }
  func.func @transform_21(%arg0: i32) -> (i32, i32) {
    %c0_i32 = arith.constant 0 : i32
    %c0_i32_0 = arith.constant 0 : i32
    %c0_i32_1 = arith.constant 0 : i32
    return %c0_i32, %c0_i32_0 : i32, i32
  }
  func.func @transform_22(%arg0: i32) -> (i32, i32) {
    %c0_i32 = arith.constant 0 : i32
    %c0_i32_0 = arith.constant 0 : i32
    %c0_i32_1 = arith.constant 0 : i32
    return %c0_i32, %c0_i32_0 : i32, i32
  }
  func.func @transform_23(%arg0: i32) -> (i32, i32) {
    %c0_i32 = arith.constant 0 : i32
    %c0_i32_0 = arith.constant 0 : i32
    %c0_i32_1 = arith.constant 0 : i32
    return %c0_i32, %c0_i32_0 : i32, i32
  }
  func.func @transform_24(%arg0: i32) -> (i32, i32) {
    %c0_i32 = arith.constant 0 : i32
    %c0_i32_0 = arith.constant 0 : i32
    %c0_i32_1 = arith.constant 0 : i32
    return %c0_i32, %c0_i32_0 : i32, i32
  }
}

</mosaic_0001>

<bundles_post_ra>
// kernel: _forward_impl.1
= control target key start
LH: loop header
LB: loop body
LE: loop exit
PB: predicated region body
PF: predicated region fallthrough
CT: control target
= control target key end

     0   :  { %s2484_s0 = inlined_call_operand.vmem [shape: s32[16,1], index: 0, kind: input, shape index: {}]   ;;  %s2485_s1 = inlined_call_operand.vmem [shape: f32[2,8], index: 1, kind: input, shape index: {}]   ;;  %s2486_s2 = inlined_call_operand.vmem [shape: s32[2,1], index: 2, kind: input, shape index: {}]   ;;  %s2487_s3 = inlined_call_operand.vmem [shape: f32[64,32], index: 3, kind: input, shape index: {}]   ;;  %s2488_s4 = inlined_call_operand.vmem [shape: f32[16,32], index: 4, kind: input, shape index: {}]   ;;  %s2489_s5 = inlined_call_operand.vmem [shape: f32[1,32], index: 5, kind: input, shape index: {}]   ;;  %s2490_s6 = inlined_call_operand.vmem [shape: f32[1,32], index: 6, kind: input, shape index: {}]   ;;  %s2491_s7 = inlined_call_operand.vmem [shape: f32[32,96], index: 7, kind: input, shape index: {}]   ;;  %s2492_s8 = inlined_call_operand.vmem [shape: f32[1,96], index: 8, kind: input, shape index: {}]   ;;  %s2493_s9 = inlined_call_operand.vmem [shape: f32[32,32], index: 9, kind: input, shape index: {}]   ;;  %s2494_s10 = inlined_call_operand.vmem [shape: f32[1,32], index: 10, kind: input, shape index: {}]   ;;  %s2495_s11 = inlined_call_operand.vmem [shape: f32[1,32], index: 11, kind: input, shape index: {}]   ;;  %s2496_s12 = inlined_call_operand.vmem [shape: f32[1,32], index: 12, kind: input, shape index: {}]   ;;  %s2497_s13 = inlined_call_operand.vmem [shape: f32[32,64], index: 13, kind: input, shape index: {}]   ;;  %s2498_s14 = inlined_call_operand.vmem [shape: f32[1,64], index: 14, kind: input, shape index: {}]   ;;  %s2499_s15 = inlined_call_operand.vmem [shape: f32[64,32], index: 15, kind: input, shape index: {}]   ;;  %s2500_s16 = inlined_call_operand.vmem [shape: f32[1,32], index: 16, kind: input, shape index: {}]   ;;  %s2501_s17 = inlined_call_operand.vmem [shape: f32[1,32], index: 17, kind: input, shape index: {}]   ;;  %s2502_s18 = inlined_call_operand.vmem [shape: f32[1,32], index: 18, kind: input, shape index: {}]   ;;  %s2503_s19 = inlined_call_operand.vmem [shape: f32[32,32], index: 19, kind: input, shape index: {}]   ;;  %s2504_s20 = inlined_call_operand.vmem [shape: f32[1,32], index: 20, kind: input, shape index: {}]   ;;  %s2505_s21 = inlined_call_operand.vmem [shape: f32[32,4], index: 21, kind: input, shape index: {}]   ;;  %s2506_s22 = inlined_call_operand.vmem [shape: f32[1,4], index: 22, kind: input, shape index: {}]   ;;  %s2507_s23 = inlined_call_operand.hbm [shape: f32[2,4], index: 23, kind: output, shape index: {0}]   ;;  %s2508_s24 = inlined_call_operand.hbm [shape: f32[1,1], index: 24, kind: output, shape index: {1}]  }
   0x1   :  { %2513 = sst [smem:[#allocation8_spill]] %s2484_s0 }
   0x2   :  { %2514 = sst [smem:[#allocation9_spill]] %s2485_s1 }
   0x3   :  { %2515 = sst [smem:[#allocation10_spill]] %s2486_s2 }
   0x4   :  { %2516 = sst [smem:[#allocation11_spill]] %s2487_s3 }
   0x5   :  { %2517 = sst [smem:[#allocation12_spill]] %s2488_s4 }
   0x6   :  { %2518 = sst [smem:[#allocation13_spill]] %s2489_s5 }
   0x7   :  { %2519 = sst [smem:[#allocation14_spill]] %s2490_s6 }
   0x8   :  { %2520 = sst [smem:[#allocation15_spill]] %s2491_s7 }
   0x9   :  { %2521 = sst [smem:[#allocation16_spill]] %s2492_s8 }
   0xa   :  { %30 = vsyncpa [#allocation3], 0  ;;  %s2522_s27 = sld [smem:[#allocation8_spill]]  ;;  %s2523_s2 = sld [smem:[#allocation11_spill]]  ;;  %v2047_v2 = vmov 0  }
   0xb   :  { %1959 = vset.pattern.permute.xlu0 %v2047_v2  ;;  %1960 = vset.pattern.permute.xlu1 %v2047_v2 }
  0x10   :  { %v78_v0 = vld [vmem:[%s2522_s27] sm:$0xff]  ;;  %v95_v3 = vld [vmem:[%s2523_s2 + $0x8] sm:$0xff]  ;;  %v96_v4 = vld [vmem:[%s2523_s2 + $0x10] sm:$0xff] }
  0x11   :  { %v94_v1 = vld [vmem:[%s2523_s2] sm:$0xff]  ;;  %v97_v5 = vld [vmem:[%s2523_s2 + $0x18] sm:$0xff]  ;;  %83 = vperm.xlu0 %1959, %v78_v0   ;;  %v79_v6 = vld [vmem:[%s2522_s27 + $0x8] sm:$0xff] }
  0x12   :  { %v1879_v7 = vpack.c.bf16 %v95_v3, %v94_v1  ;;  %v1883_v8 = vpack.c.bf16 %v97_v5, %v96_v4  ;;  %v98_v9 = vld [vmem:[%s2523_s2 + $0x20] sm:$0xff]  ;;  %v99_v10 = vld [vmem:[%s2523_s2 + $0x28] sm:$0xff] }
  0x13   :  { %31 = vsyncpa [#allocation5], 0  ;;  %v1887_v11 = vpack.c.bf16 %v99_v10, %v98_v9  ;;  %v100_v12 = vld [vmem:[%s2523_s2 + $0x30] sm:$0xff]  ;;  %v101_v13 = vld [vmem:[%s2523_s2 + $0x38] sm:$0xff]  ;;  %v2048_v15 = vmov 0.0   ;;  %v80_v16 = vlaneseq  ;;  %vm104_vm0 = vcmask 523264  }
  0x14   :  { %1880 = vmatprep.subr.bf16.mxu0 %v1879_v7  ;;  %v1891_v14 = vpack.c.bf16 %v101_v13, %v100_v12  ;;  %s2524_s30 = sld [smem:[#allocation12_spill]]  ;;  %vm188_vm3 = vcmask 261120   ;;  %s2525_s1 = sld [smem:[#allocation15_spill]]  ;;  %vm2049_vm4 = vmmov 0   ;;  %vm328_vm5 = vcmask 130048  }
  0x15   :  { %1882 = vmatpush3.bf16.msra.mxu0 %v1879_v7  ;;  %86 = vperm.xlu0 %1959, %v79_v6   ;;  %v2216_v17 = vand.u32 127, %v80_v16  ;;  %s2526_s7 = sld [smem:[#allocation13_spill]]  ;;  %s2527_s25 = sld [smem:[#allocation14_spill]]  ;;  %vm411_vm6 = vcmask 64512   ;;  %vm1406_vm7 = vcmask 1040384   ;;  %vm1577_vm8 = vcmask 25600  }
  0x16   :  { %1884 = vmatprep.subr.bf16.mxu0 %v1883_v8  ;;  %s2050_s5 = smov 80   ;;  %s2051_s26 = smov 96  }
  0x17   :  { %s2052_s28 = smov 112   ;;  %s2529_s27 = sld [smem:[#allocation9_spill]] }
  0x18   :  { %s2053_s0 = smov 64   ;;  %s2054_s2 = smov 48  }
  0x19   :  { %1886 = vmatpush3.bf16.msra.mxu0 %v1883_v8 }
  0x1a   :  { %1888 = vmatprep.subr.bf16.mxu0 %v1887_v11  ;;  %v102_v22 = vld [vmem:[%s2524_s30] sm:$0xff]  ;;  %v103_v24 = vld [vmem:[%s2524_s30 + $0x8] sm:$0xff]  ;;  %v234_v42 = vld [vmem:[%s2525_s1 + $0x10] sm:$0xff] }
  0x1b   :  { %v232_v40 = vld [vmem:[%s2525_s1] sm:$0xff]  ;;  %v233_v41 = vld [vmem:[%s2525_s1 + $0x8] sm:$0xff]  ;;  %v235_v44 = vld [vmem:[%s2525_s1 + $0x18] sm:$0xff]  ;;  %s2528_s1 = sld [smem:[#allocation16_spill]] }
  0x1c   :  { %v1895_v43 = vpack.c.bf16 %v233_v41, %v232_v40  ;;  %v1899_v45 = vpack.c.bf16 %v235_v44, %v234_v42  ;;  %v1647_v53 = vld [vmem:[%s2526_s7] ss:$0 sm:$0xff] }
  0x1d   :  { %1890 = vmatpush3.bf16.msra.mxu0 %v1887_v11  ;;  %v1648_v55 = vld [vmem:[%s2527_s25] ss:$0 sm:$0xff]  ;;  %v407_v11 = vshrl.u32 %v80_v16, 7 }
  0x1e   :  { %1892 = vmatprep.subr.bf16.mxu0 %v1891_v14  ;;  %1896 = vmatprep.subr.bf16.mxu1 %v1895_v43  ;;  %v324_v9 = vld [vmem:[%s2529_s27] sm:$0x3] }
  0x1f   :  { %1898 = vmatpush3.bf16.msra.mxu1 %v1895_v43  ;;  %v404_v10 = vsub.f32 1.0, %v324_v9  ;;  %v408_v13 = vsub.s32 0, %v407_v11 }
  0x20   :  { %1900 = vmatprep.subr.bf16.mxu1 %v1899_v45 }
  0x21   :  { %1894 = vmatpush3.bf16.msra.mxu0 %v1891_v14  ;;  %v1649_v62 = vld [vmem:[%s2528_s1] ss:$0 sm:$0xff]  ;;  %v405_v12 = vmul.f32 -1e+09, %v404_v10 }
  0x22   :  { %1786 = vmatprep.subr.mxu0 %v2048_v15 }
  0x23   :  { %1902 = vmatpush3.bf16.msra.mxu1 %v1899_v45  ;;  %v409_v14 = vrot.slane %v405_v12, %v408_v13  ;;  %v1013_v13 = vld [vmem:[%s2493_s9] sm:$0xff] }
  0x24   :  { %1776 = vmatprep.subr.mxu1 %v2048_v15 }
  0x90   :  { %v84_v18 = vpop.permute.xlu0 %83 }
  0x91   :  { %vm88_vm1 = vcmp.eq.s32.totalorder %v84_v18, %v2216_v17 }
  0x92   :  { %v1643_v19 = vsel %vm88_vm1, 1.0, %v2048_v15 }
  0x93   :  { %1762 = vmatprep.mubr.msk.f32.mxu0 %vm104_vm0, %v1643_v19 }
  0x94   :  { %v87_v20 = vpop.permute.xlu0 %86 }
  0x95   :  { %vm89_vm2 = vcmp.eq.s32.totalorder %v87_v20, %v2216_v17 }
  0x96   :  { %v1644_v21 = vsel %vm89_vm2, 1.0, %v2048_v15 }
  0x97   :  { %1763 = vmatmul.mubr.msk.f32.vlgmr.msra.gmra.mrb[0].mxu0 %vm104_vm0, %v1644_v21 }
  0x98   :  { %1788 = vmatprep.mubr.msk.f32.mxu0 %vm2049_vm4, %v2048_v15 }
 0x16a   :  { %v1764_v23 = vpop.f32.mrb[0].mxu0 }
 0x16b   :  { %v177_v25 = vpop.f32.mrb[1].mxu0  ;;  %v183_v27 = vadd.f32 %v1764_v23, %v103_v24 }
 0x16c   :  { %v178_v26 = vadd.f32 %v177_v25, %v102_v22 }
 0x16d   :  { %v192_v29 = vsel %vm188_vm3, %v183_v27, 0.0 }
 0x16e   :  { %v189_v28 = vsel %vm188_vm3, %v178_v26, 0.0 }
 0x16f   :  { %190 = vadd.xlane.f32.xlu1 %v189_v28 }
 0x173   :  { %193 = vadd.xlane.f32.xlu1 %v192_v29 }
 0x1fc   :  { %v191_v30 = vpop.xlane.xlu1 %190 }
 0x1fd   :  { %v196_v31 = vmul.f32 0.03125, %v191_v30 }
 0x1ff   :  { %v198_v32 = vsub.f32 %v178_v26, %v196_v31  ;;  %v751_v26 = vsub.s32 1, %v407_v11 }
 0x200   :  { %v194_v33 = vpop.xlane.xlu1 %193 }
 0x201   :  { %v197_v34 = vmul.f32 0.03125, %v194_v33  ;;  %v200_v35 = vmul.f32 %v198_v32, %v198_v32  ;;  %v752_v16 = vrot.slane %v405_v12, %v751_v26 }
 0x203   :  { %v199_v36 = vsub.f32 %v183_v27, %v197_v34  ;;  %v202_v37 = vsel %vm188_vm3, %v200_v35, 0.0 }
 0x204   :  { %203 = vadd.xlane.f32.xlu0 %v202_v37 }
 0x205   :  { %v201_v38 = vmul.f32 %v199_v36, %v199_v36 }
 0x207   :  { %v205_v39 = vsel %vm188_vm3, %v201_v38, 0.0 }
 0x208   :  { %206 = vadd.xlane.f32.xlu1 %v205_v39 }
 0x291   :  { %v204_v46 = vpop.xlane.xlu0 %203 }
 0x292   :  { %v208_v47 = vmul.f32 0.03125, %v204_v46 }
 0x294   :  { %v210_v48 = vadd.f32 1e-12, %v208_v47 }
 0x295   :  { %v207_v49 = vpop.xlane.xlu1 %206 }
 0x296   :  { %1961 = vrsqrt.f32 %v210_v48  ;;  %v209_v50 = vmul.f32 0.03125, %v207_v49 }
 0x298   :  { %v211_v51 = vadd.f32 1e-12, %v209_v50 }
 0x29a   :  { %1963 = vrsqrt.f32 %v211_v51 }
 0x2a0   :  { %v1962_v52 = vpop.eup %1961 }
 0x2a1   :  { %v214_v54 = vmul.f32 %v1962_v52, %v198_v32 }
 0x2a3   :  { %v222_v56 = vmul.f32 %v1647_v53, %v214_v54 }
 0x2a4   :  { %v1964_v57 = vpop.eup %1963 }
 0x2a5   :  { %v215_v58 = vmul.f32 %v1964_v57, %v199_v36  ;;  %v2253_v59 = vadd.f32 %v1648_v55, %v222_v56 }
 0x2a7   :  { %v223_v60 = vmul.f32 %v1647_v53, %v215_v58  ;;  %1773 = vmatprep.mubr.msk.f32.mxu1 %vm188_vm3, %v2253_v59 }
 0x2a9   :  { %v2257_v61 = vadd.f32 %v1648_v55, %v223_v60 }
 0x2ab   :  { %1774 = vmatmul.mubr.msk.f32.vlgmr.msra.gmra.mrb[0].mxu1 %vm188_vm3, %v2257_v61 }
 0x2ac   :  { %1778 = vmatprep.mubr.msk.f32.mxu1 %vm2049_vm4, %v2048_v15 }
 0x37e   :  { %v1775_v63 = vpop.f32.mrb[0].mxu1 }
 0x37f   :  { %v2268_v0 = vadd.f32 %v1775_v63, %v1649_v62  ;;  %v315_v1 = vpop.f32.mrb[1].mxu1 }
 0x380   :  { %v2270_v2 = vadd.f32 %v1649_v62, %v315_v1 }
 0x381   :  { %843 = vrot.lane.b32.xlu0 %v2268_v0, %s2050_s5 }
 0x382   :  { %326 = vrot.lane.b32.xlu1 %v2270_v2, %s2051_s26 }
 0x386   :  { %501 = vrot.lane.b32.xlu1 %v2270_v2, %s2050_s5 }
 0x38a   :  { %499 = vrot.lane.b32.xlu1 %v2270_v2, %s2052_s28 }
 0x38e   :  { %672 = vrot.lane.b32.xlu1 %v2268_v0, %s2051_s26  ;;  %s2055_s26 = smov 16  }
 0x392   :  { %841 = vrot.lane.b32.xlu1 %v2268_v0, %s2052_s28 }
 0x3f3   :  { %v844_v7 = vpop.permute.xlu0 %843 }
 0x3f4   :  { %v327_v3 = vpop.permute.xlu1 %326 }
 0x3f5   :  { %1777 = vmatpush3.xpose.msk.msra.mxu1 %vm328_vm5, %v327_v3 }
 0x3f6   :  { %1781 = vmatprep.subr.mxu1 %v2048_v15 }
 0x3f8   :  { %1779 = vmatmul.mubr.msk.f32.vlgmr.msra.gmra.mrb[2].mxu1 %vm328_vm5, %v2270_v2  ;;  %v502_v4 = vpop.permute.xlu1 %501 }
 0x3f9   :  { %1787 = vmatpush3.xpose.msk.msra.mxu0 %vm328_vm5, %v502_v4  ;;  %1783 = vmatprep.mubr.msk.f32.mxu1 %vm2049_vm4, %v2048_v15 }
 0x3fa   :  { %1796 = vmatprep.subr.mxu0 %v2048_v15 }
 0x3fc   :  { %v500_v5 = vpop.permute.xlu1 %499 }
 0x3fd   :  { %1789 = vmatmul.mubr.msk.f32.vlgmr.msra.gmra.mrb[2].mxu0 %vm328_vm5, %v500_v5 }
 0x3fe   :  { %1798 = vmatprep.mubr.msk.f32.mxu0 %vm2049_vm4, %v2048_v15 }
 0x400   :  { %v673_v6 = vpop.permute.xlu1 %672 }
 0x401   :  { %1797 = vmatpush3.xpose.msk.msra.mxu0 %vm328_vm5, %v673_v6 }
 0x402   :  { %1806 = vmatprep.subr.mxu0 %v2048_v15 }
 0x404   :  { %1799 = vmatmul.mubr.msk.f32.vlgmr.msra.gmra.mrb[4].mxu0 %vm328_vm5, %v2268_v0  ;;  %v842_v8 = vpop.permute.xlu1 %841 }
 0x405   :  { %1807 = vmatpush3.xpose.msk.msra.mxu0 %vm328_vm5, %v844_v7  ;;  %1808 = vmatprep.mubr.msk.f32.mxu0 %vm2049_vm4, %v2048_v15 }
 0x408   :  { %1809 = vmatmul.mubr.msk.f32.vlgmr.msra.gmra.mrb[6].mxu0 %vm328_vm5, %v842_v8 }
 0x4cb   :  { %v399_v18 = vpop.f32.mrb[2].mxu1 }
 0x4cc   :  { %v403_v19 = vmul.f32 0.25, %v399_v18  ;;  %v1780_v20 = vpop.f32.mrb[3].mxu1 }
 0x4cd   :  { %v1016_v20 = vld [vmem:[%s2493_s9 + $0x18] sm:$0xff] }
 0x4ce   :  { %v410_v21 = vadd.f32 %v409_v14, %v403_v19  ;;  %v1015_v19 = vld [vmem:[%s2493_s9 + $0x10] sm:$0xff] }
 0x4d0   :  { %v573_v22 = vpop.f32.mrb[2].mxu0  ;;  %v412_v23 = vsel %vm411_vm6, %v410_v21, -inf }
 0x4d1   :  { %v577_v24 = vmul.f32 0.25, %v573_v22  ;;  %413 = vmax.xlane.f32.xlu1 %v412_v23  ;;  %v1790_v25 = vpop.f32.mrb[3].mxu0 }
 0x4d3   :  { %v578_v27 = vadd.f32 %v577_v24, %v409_v14  ;;  %v1014_v14 = vld [vmem:[%s2493_s9 + $0x8] sm:$0xff] }
 0x4d4   :  { %v1903_v18 = vpack.c.bf16 %v1014_v14, %v1013_v13  ;;  %v1263_v13 = vld [vmem:[%s2499_s15 + $0x10] sm:$0xff]  ;;  %v1264_v14 = vld [vmem:[%s2499_s15 + $0x18] sm:$0xff] }
 0x4d5   :  { %v579_v28 = vsel %vm411_vm6, %v578_v27, -inf }
 0x4d6   :  { %580 = vmax.xlane.f32.xlu0 %v579_v28  ;;  %1904 = vmatprep.subr.bf16.mxu0 %v1903_v18 }
 0x4d7   :  { %v744_v29 = vpop.f32.mrb[4].mxu0  ;;  %1906 = vmatpush3.bf16.msra.mxu0 %v1903_v18  ;;  %v1923_v18 = vpack.c.bf16 %v1264_v14, %v1263_v13 }
 0x4d8   :  { %v748_v30 = vmul.f32 0.25, %v744_v29  ;;  %v1800_v31 = vpop.f32.mrb[5].mxu0 }
 0x4da   :  { %v753_v32 = vadd.f32 %v752_v16, %v748_v30 }
 0x4db   :  { %v915_v33 = vpop.f32.mrb[6].mxu0 }
 0x4dc   :  { %v919_v34 = vmul.f32 0.25, %v915_v33  ;;  %v1810_v35 = vpop.f32.mrb[7].mxu0  ;;  %v754_v36 = vsel %vm411_vm6, %v753_v32, -inf  ;;  %v1664_v33 = vld [vmem:[%s2494_s10] ss:$0 sm:$0xff] }
 0x4dd   :  { %755 = vmax.xlane.f32.xlu1 %v754_v36 }
 0x4de   :  { %v920_v37 = vadd.f32 %v919_v34, %v752_v16 }
 0x4e0   :  { %v921_v38 = vsel %vm411_vm6, %v920_v37, -inf }
 0x4e1   :  { %922 = vmax.xlane.f32.xlu1 %v921_v38 }
 0x4f2   :  { %423 = vrot.lane.b32.xlu1 %v2270_v2, %s2053_s0 }
 0x55e   :  { %v414_v39 = vpop.xlane.xlu1 %413 }
 0x55f   :  { %v415_v40 = vsub.f32 %v410_v21, %v414_v39  ;;  %v1907_v21 = vpack.c.bf16 %v1016_v20, %v1015_v19  ;;  %v1265_v19 = vld [vmem:[%s2499_s15 + $0x20] sm:$0xff]  ;;  %v1266_v20 = vld [vmem:[%s2499_s15 + $0x28] sm:$0xff] }
 0x561   :  { %v416_v41 = vmul.f32 1.442695, %v415_v40  ;;  %1908 = vmatprep.subr.bf16.mxu0 %v1907_v21 }
 0x562   :  { %1910 = vmatpush3.bf16.msra.mxu0 %v1907_v21  ;;  %v1927_v21 = vpack.c.bf16 %v1266_v20, %v1265_v19  ;;  %v1675_v19 = vld [vmem:[%s2501_s17] ss:$0 sm:$0xff] }
 0x563   :  { %1965 = vpow2.f32 %v416_v41  ;;  %v581_v42 = vpop.xlane.xlu0 %580 }
 0x564   :  { %v582_v43 = vsub.f32 %v578_v27, %v581_v42 }
 0x566   :  { %v583_v44 = vmul.f32 1.442695, %v582_v43 }
 0x568   :  { %1967 = vpow2.f32 %v583_v44 }
 0x56a   :  { %v756_v45 = vpop.xlane.xlu1 %755 }
 0x56b   :  { %v757_v46 = vsub.f32 %v753_v32, %v756_v45 }
 0x56d   :  { %v1966_v47 = vpop.eup %1965  ;;  %v758_v48 = vmul.f32 1.442695, %v757_v46 }
 0x56e   :  { %v923_v49 = vpop.xlane.xlu1 %922  ;;  %v418_v50 = vsel %vm411_vm6, %v1966_v47, 0.0 }
 0x56f   :  { %1969 = vpow2.f32 %v758_v48  ;;  %v924_v51 = vsub.f32 %v920_v37, %v923_v49  ;;  %419 = vadd.xlane.f32.xlu1 %v418_v50 }
 0x571   :  { %v925_v52 = vmul.f32 1.442695, %v924_v51  ;;  %v1152_v51 = vld [vmem:[%s2497_s13 + $0x8] sm:$0xff] }
 0x572   :  { %v1968_v53 = vpop.eup %1967  ;;  %v424_v54 = vpop.permute.xlu1 %423 }
 0x573   :  { %1971 = vpow2.f32 %v925_v52  ;;  %1782 = vmatpush3.msra.mxu1 %v424_v54  ;;  %v585_v55 = vsel %vm411_vm6, %v1968_v53, 0.0  ;;  %v1154_v54 = vld [vmem:[%s2497_s13 + $0x18] sm:$0xff] }
 0x574   :  { %586 = vadd.xlane.f32.xlu0 %v585_v55  ;;  %1791 = vmatprep.subr.mxu1 %v2048_v15 }
 0x579   :  { %v1970_v56 = vpop.eup %1969 }
 0x57a   :  { %v760_v57 = vsel %vm411_vm6, %v1970_v56, 0.0 }
 0x57b   :  { %761 = vadd.xlane.f32.xlu1 %v760_v57 }
 0x57d   :  { %v1972_v58 = vpop.eup %1971 }
 0x57e   :  { %v927_v60 = vsel %vm411_vm6, %v1972_v58, 0.0 }
 0x57f   :  { %928 = vadd.xlane.f32.xlu0 %v927_v60 }
 0x58c   :  { %765 = vrot.lane.b32.xlu1 %v2268_v0, %s2053_s0 }
 0x590   :  { %932 = vrot.lane.b32.xlu1 %v2268_v0, %s2054_s2 }
 0x595   :  { %590 = vrot.lane.b32.xlu0 %v2270_v2, %s2054_s2 }
 0x5fc   :  { %v420_v62 = vpop.xlane.xlu1 %419 }
 0x5fd   :  { %1973 = vrcp.f32 %v420_v62 }
 0x601   :  { %v587_v63 = vpop.xlane.xlu0 %586 }
 0x602   :  { %1975 = vrcp.f32 %v587_v63 }
 0x607   :  { %v1974_v1 = vpop.eup %1973 }
 0x608   :  { %v422_v3 = vmul.f32 %v1974_v1, %v1966_v47  ;;  %v762_v4 = vpop.xlane.xlu1 %761 }
 0x609   :  { %1977 = vrcp.f32 %v762_v4 }
 0x60a   :  { %1784 = vmatmul.mubr.msk.f32.vlgmr.msra.gmra.mrb[4].mxu1 %vm411_vm6, %v422_v3  ;;  %v1667_v3 = vld [vmem:[%s2495_s11] ss:$0 sm:$0xff] }
 0x60b   :  { %1793 = vmatprep.mubr.msk.f32.mxu1 %vm2049_vm4, %v2048_v15 }
 0x60c   :  { %v929_v5 = vpop.xlane.xlu0 %928  ;;  %v1976_v6 = vpop.eup %1975 }
 0x60d   :  { %1979 = vrcp.f32 %v929_v5  ;;  %v589_v7 = vmul.f32 %v1976_v6, %v1968_v53  ;;  %v766_v0 = vpop.permute.xlu1 %765  ;;  %v1153_v53 = vld [vmem:[%s2497_s13 + $0x10] sm:$0xff]  ;;  %v1668_v5 = vld [vmem:[%s2496_s12] ss:$0 sm:$0xff] }
 0x60e   :  { %v1915_v55 = vpack.c.bf16 %v1154_v54, %v1153_v53 }
 0x610   :  { %v591_v8 = vpop.permute.xlu0 %590 }
 0x611   :  { %1792 = vmatpush3.msra.mxu1 %v591_v8  ;;  %v933_v10 = vpop.permute.xlu1 %932 }
 0x612   :  { %1794 = vmatmul.mubr.msk.f32.vlgmr.msra.gmra.mrb[6].mxu1 %vm411_vm6, %v589_v7  ;;  %1801 = vmatprep.subr.mxu1 %v2048_v15 }
 0x613   :  { %v1978_v2 = vpop.eup %1977  ;;  %1802 = vmatpush3.msra.mxu1 %v766_v0  ;;  %1803 = vmatprep.mubr.msk.f32.mxu1 %vm2049_vm4, %v2048_v15 }
 0x614   :  { %v764_v9 = vmul.f32 %v1978_v2, %v1970_v56  ;;  %1811 = vmatprep.subr.mxu1 %v2048_v15 }
 0x616   :  { %1804 = vmatmul.mubr.msk.f32.vlgmr.msra.gmra.mrb[8].mxu1 %vm411_vm6, %v764_v9 }
 0x617   :  { %v1980_v11 = vpop.eup %1979  ;;  %1812 = vmatpush3.msra.mxu1 %v933_v10  ;;  %1813 = vmatprep.mubr.msk.f32.mxu1 %vm2049_vm4, %v2048_v15  ;;  %v1261_v10 = vld [vmem:[%s2499_s15] sm:$0xff] }
 0x618   :  { %v931_v12 = vmul.f32 %v1980_v11, %v1972_v58  ;;  %v1262_v11 = vld [vmem:[%s2499_s15 + $0x8] sm:$0xff] }
 0x61a   :  { %1814 = vmatmul.mubr.msk.f32.vlgmr.msra.gmra.mrb[10].mxu1 %vm411_vm6, %v931_v12  ;;  %v1919_v12 = vpack.c.bf16 %v1262_v11, %v1261_v10 }
 0x61c   :  { %1920 = vmatprep.subr.bf16.mxu0 %v1919_v12 }
 0x6dd   :  { %v495_v22 = vpop.f32.mrb[4].mxu1 }
 0x6de   :  { %v1785_v23 = vpop.f32.mrb[5].mxu1 }
 0x6df   :  { %v1268_v23 = vld [vmem:[%s2499_s15 + $0x38] sm:$0xff] }
 0x6e5   :  { %v662_v24 = vpop.f32.mrb[6].mxu1 }
 0x6e6   :  { %667 = vrot.lane.b32.xlu0 %v662_v24, %s2055_s26  ;;  %v1795_v25 = vpop.f32.mrb[7].mxu1 }
 0x6e7   :  { %v1669_v25 = vld [vmem:[%s2498_s14] ss:$0 sm:$0xff]  ;;  %s2530_s14 = sld [smem:[#allocation10_spill]] }
 0x6e9   :  { %v837_v26 = vpop.f32.mrb[8].mxu1 }
 0x6ea   :  { %v1805_v27 = vpop.f32.mrb[9].mxu1 }
 0x6ed   :  { %v1004_v28 = vpop.f32.mrb[10].mxu1 }
 0x6ee   :  { %1009 = vrot.lane.b32.xlu1 %v1004_v28, %s2055_s26  ;;  %v1815_v16 = vpop.f32.mrb[11].mxu1 }
 0x758   :  { %v668_v29 = vpop.permute.xlu0 %667 }
 0x759   :  { %v670_v30 = vsel %vm328_vm5, %v495_v22, %v668_v29  ;;  %v1267_v22 = vld [vmem:[%s2499_s15 + $0x30] sm:$0xff] }
 0x75a   :  { %1824 = vmatprep.mubr.msk.f32.mxu0 %vm188_vm3, %v670_v30  ;;  %v1931_v24 = vpack.c.bf16 %v1268_v23, %v1267_v22  ;;  %v1676_v23 = vld [vmem:[%s2502_s18] ss:$0 sm:$0xff] }
 0x760   :  { %v1010_v31 = vpop.permute.xlu1 %1009 }
 0x761   :  { %v1012_v32 = vsel %vm328_vm5, %v837_v26, %v1010_v31 }
 0x762   :  { %1825 = vmatmul.mubr.msk.f32.vlgmr.msra.gmra.mrb[8].mxu0 %vm188_vm3, %v1012_v32 }
 0x763   :  { %1922 = vmatpush3.bf16.msra.mxu0 %v1919_v12 }
 0x764   :  { %1924 = vmatprep.subr.bf16.mxu0 %v1923_v18 }
 0x767   :  { %1926 = vmatpush3.bf16.msra.mxu0 %v1923_v18 }
 0x768   :  { %1928 = vmatprep.subr.bf16.mxu0 %v1927_v21 }
 0x76b   :  { %1930 = vmatpush3.bf16.msra.mxu0 %v1927_v21 }
 0x76c   :  { %1932 = vmatprep.subr.bf16.mxu0 %v1931_v24 }
 0x76f   :  { %1934 = vmatpush3.bf16.msra.mxu0 %v1931_v24 }
 0x835   :  { %v1826_v34 = vpop.f32.mrb[8].mxu0 }
 0x836   :  { %v1102_v35 = vadd.f32 %v1826_v34, %v1664_v33  ;;  %v1096_v36 = vpop.f32.mrb[9].mxu0 }
 0x837   :  { %v1097_v37 = vadd.f32 %v1664_v33, %v1096_v36 }
 0x838   :  { %v1106_v38 = vadd.f32 %v1102_v35, %v2257_v61 }
 0x839   :  { %v1105_v39 = vadd.f32 %v1097_v37, %v2253_v59  ;;  %v1151_v59 = vld [vmem:[%s2497_s13] sm:$0xff] }
 0x83a   :  { %v1112_v40 = vsel %vm188_vm3, %v1106_v38, 0.0  ;;  %v1911_v52 = vpack.c.bf16 %v1152_v51, %v1151_v59 }
 0x83b   :  { %1113 = vadd.xlane.f32.xlu1 %v1112_v40  ;;  %v1109_v41 = vsel %vm188_vm3, %v1105_v39, 0.0 }
 0x83c   :  { %1110 = vadd.xlane.f32.xlu0 %v1109_v41  ;;  %1912 = vmatprep.subr.bf16.mxu1 %v1911_v52 }
 0x83d   :  { %1914 = vmatpush3.bf16.msra.mxu1 %v1911_v52 }
 0x83e   :  { %1916 = vmatprep.subr.bf16.mxu1 %v1915_v55 }
 0x841   :  { %1918 = vmatpush3.bf16.msra.mxu1 %v1915_v55 }
 0x8c8   :  { %v1114_v42 = vpop.xlane.xlu1 %1113 }
 0x8c9   :  { %v1116_v43 = vmul.f32 0.03125, %v1114_v42  ;;  %v1111_v44 = vpop.xlane.xlu0 %1110 }
 0x8ca   :  { %v1115_v45 = vmul.f32 0.03125, %v1111_v44 }
 0x8cb   :  { %v1118_v46 = vsub.f32 %v1106_v38, %v1116_v43 }
 0x8cc   :  { %v1117_v47 = vsub.f32 %v1105_v39, %v1115_v45 }
 0x8cd   :  { %v1120_v50 = vmul.f32 %v1118_v46, %v1118_v46 }
 0x8ce   :  { %v1119_v48 = vmul.f32 %v1117_v47, %v1117_v47 }
 0x8cf   :  { %v1124_v61 = vsel %vm188_vm3, %v1120_v50, 0.0 }
 0x8d0   :  { %v1121_v49 = vsel %vm188_vm3, %v1119_v48, 0.0 }
 0x8d1   :  { %1122 = vadd.xlane.f32.xlu0 %v1121_v49 }
 0x8d5   :  { %1125 = vadd.xlane.f32.xlu0 %v1124_v61 }
 0x95e   :  { %v1123_v56 = vpop.xlane.xlu0 %1122 }
 0x95f   :  { %v1127_v57 = vmul.f32 0.03125, %v1123_v56 }
 0x961   :  { %v1129_v58 = vadd.f32 1e-12, %v1127_v57 }
 0x962   :  { %v1126_v60 = vpop.xlane.xlu0 %1125 }
 0x963   :  { %1981 = vrsqrt.f32 %v1129_v58  ;;  %v1128_v62 = vmul.f32 0.03125, %v1126_v60 }
 0x965   :  { %v1130_v63 = vadd.f32 1e-12, %v1128_v62 }
 0x967   :  { %1983 = vrsqrt.f32 %v1130_v63 }
 0x96d   :  { %v1982_v1 = vpop.eup %1981 }
 0x96e   :  { %v1133_v4 = vmul.f32 %v1982_v1, %v1117_v47  ;;  %v1672_v47 = vld [vmem:[%s2500_s16] ss:$0 sm:$0xff] }
 0x970   :  { %v1141_v6 = vmul.f32 %v1667_v3, %v1133_v4  ;;  %v1408_v4 = vld [vmem:[%s2503_s19] sm:$0xff] }
 0x971   :  { %v1984_v7 = vpop.eup %1983 }
 0x972   :  { %v1134_v0 = vmul.f32 %v1984_v7, %v1118_v46  ;;  %v1149_v8 = vadd.f32 %v1668_v5, %v1141_v6  ;;  %v1410_v7 = vld [vmem:[%s2503_s19 + $0x10] sm:$0xff] }
 0x974   :  { %v1142_v2 = vmul.f32 %v1667_v3, %v1134_v0  ;;  %1835 = vmatprep.mubr.msk.f32.mxu1 %vm188_vm3, %v1149_v8  ;;  %v1411_v0 = vld [vmem:[%s2503_s19 + $0x18] sm:$0xff] }
 0x976   :  { %v1150_v9 = vadd.f32 %v1668_v5, %v1142_v2  ;;  %v1409_v5 = vld [vmem:[%s2503_s19 + $0x8] sm:$0xff]  ;;  %v1939_v2 = vpack.c.bf16 %v1411_v0, %v1410_v7 }
 0x977   :  { %v1936_v6 = vpack.c.bf16 %v1409_v5, %v1408_v4 }
 0x978   :  { %1836 = vmatmul.mubr.msk.f32.vlgmr.msra.gmra.mrb[12].mxu1 %vm188_vm3, %v1150_v9 }
 0x979   :  { %1865 = vmatprep.mubr.msk.f32.mxu1 %vm2049_vm4, %v2048_v15 }
 0xa4b   :  { %v1837_v26 = vpop.f32.mrb[12].mxu1 }
 0xa4c   :  { %v1240_v27 = vadd.f32 %v1837_v26, %v1669_v25  ;;  %v1234_v28 = vpop.f32.mrb[13].mxu1 }
 0xa4d   :  { %v1235_v16 = vadd.f32 %v1669_v25, %v1234_v28 }
 0xa4e   :  { %v1246_v29 = vmul.f32 0.044715, %v1240_v27  ;;  %v1244_v44 = vmul.f32 0.5, %v1240_v27 }
 0xa4f   :  { %v1245_v30 = vmul.f32 0.044715, %v1235_v16  ;;  %v1243_v42 = vmul.f32 0.5, %v1235_v16 }
 0xa50   :  { %v1248_v31 = vmul.f32 %v1246_v29, %v1240_v27  ;;  %v1493_v29 = vld [vmem:[%s2505_s21] sm:$0xff] }
 0xa51   :  { %v1247_v32 = vmul.f32 %v1245_v30, %v1235_v16  ;;  %v1494_v30 = vld [vmem:[%s2505_s21 + $0x8] sm:$0xff] }
 0xa52   :  { %v1250_v33 = vmul.f32 %v1248_v31, %v1240_v27  ;;  %v1495_v31 = vld [vmem:[%s2505_s21 + $0x10] sm:$0xff] }
 0xa53   :  { %v1249_v34 = vmul.f32 %v1247_v32, %v1235_v16  ;;  %v1942_v32 = vpack.c.bf16 %v1494_v30, %v1493_v29 }
 0xa54   :  { %v1252_v35 = vadd.f32 %v1250_v33, %v1240_v27  ;;  %v1496_v33 = vld [vmem:[%s2505_s21 + $0x18] sm:$0xff] }
 0xa55   :  { %v1251_v36 = vadd.f32 %v1249_v34, %v1235_v16  ;;  %v1945_v34 = vpack.c.bf16 %v1496_v33, %v1495_v31 }
 0xa56   :  { %v1254_v37 = vmul.f32 0.7978846, %v1252_v35  ;;  %v1677_v35 = vld [vmem:[%s2504_s20] ss:$0 sm:$0xff] }
 0xa57   :  { %v1253_v38 = vmul.f32 0.7978846, %v1251_v36 }
 0xa58   :  { %1985 = vtanh.f32 %v1254_v37 }
 0xa59   :  { %1987 = vtanh.f32 %v1253_v38 }
 0xa62   :  { %v1986_v39 = vpop.eup %1985 }
 0xa63   :  { %v1988_v40 = vpop.eup %1987  ;;  %v1258_v41 = vadd.f32 1.0, %v1986_v39 }
 0xa64   :  { %v1257_v43 = vadd.f32 1.0, %v1988_v40  ;;  %v1679_v40 = vld [vmem:[%s2506_s22] ss:$0 sm:$0xff]  ;;  %s2057_s22 = smov [#allocation2]  }
 0xa65   :  { %v1260_v46 = vmul.f32 %v1258_v41, %v1244_v44  ;;  %s1621_s15 = sshll.u32 %s2057_s22, 4  ;;  %s1622_s15 = int_to_ptr.vmem [resolvable:$true] %s1621_s15 }
 0xa66   :  { %v1259_v45 = vmul.f32 %v1257_v43, %v1243_v42  ;;  %s1999_s16 = scalar_lea.vmem %s1622_s15, 32  ;;  %p2004_p1 = scmp.lt.s32.totalorder %s1622_s15, %s1622_s15 }
 0xa67   :  { %p2000_p0 = scmp.ne.s32.totalorder %s1622_s15, %s1999_s16  ;;  %p2005_p2 = scmp.lt.s32.totalorder %s1999_s16, %s1999_s16 }
 0xa68   :  { %1854 = vmatprep.mubr.msk.f32.mxu0 %vm104_vm0, %v1259_v45  ;;  %v1579_v45 = vld [vmem:[%s2530_s14] sm:$0x3] }
 0xa69   :  { %1855 = vmatmul.mubr.msk.f32.vlgmr.msra.gmra.mrb[10].mxu0 %vm104_vm0, %v1260_v46  ;;  %p2006_p3 = por %p2005_p2, %p2004_p1 }
 0xa6b   :  { %p2007_p4 = pnand %p2006_p3, %p2000_p0 }
 0xb3c   :  { %v1856_v48 = vpop.f32.mrb[10].mxu0 }
 0xb3d   :  { %v1354_v49 = vadd.f32 %v1856_v48, %v1672_v47  ;;  %v1348_v50 = vpop.f32.mrb[11].mxu0 }
 0xb3e   :  { %v1349_v61 = vadd.f32 %v1672_v47, %v1348_v50 }
 0xb3f   :  { %v1358_v59 = vadd.f32 %v1354_v49, %v1150_v9 }
 0xb40   :  { %v1357_v51 = vadd.f32 %v1349_v61, %v1149_v8  ;;  %v2056_v8 = vmov 0.0|0.0  }
 0xb41   :  { %v1364_v52 = vsel %vm188_vm3, %v1358_v59, 0.0  ;;  %1935 = vmatprep.subr.bf16.mxu1 %v2056_v8 }
 0xb42   :  { %1365 = vadd.xlane.f32.xlu1 %v1364_v52  ;;  %v1361_v53 = vsel %vm188_vm3, %v1357_v51, 0.0  ;;  %1937 = vmatpush3.bf16.msra.mxu1 %v1936_v6 }
 0xb43   :  { %1362 = vadd.xlane.f32.xlu0 %v1361_v53  ;;  %1938 = vmatprep.subr.bf16.mxu1 %v2056_v8 }
 0xb46   :  { %1940 = vmatpush3.bf16.msra.mxu1 %v1939_v2 }
 0xb47   :  { %1941 = vmatprep.subr.bf16.mxu1 %v2056_v8 }
 0xbcf   :  { %v1366_v54 = vpop.xlane.xlu1 %1365 }
 0xbd0   :  { %v1368_v55 = vmul.f32 0.03125, %v1366_v54  ;;  %v1363_v56 = vpop.xlane.xlu0 %1362 }
 0xbd1   :  { %v1367_v57 = vmul.f32 0.03125, %v1363_v56 }
 0xbd2   :  { %v1370_v58 = vsub.f32 %v1358_v59, %v1368_v55 }
 0xbd3   :  { %v1369_v60 = vsub.f32 %v1357_v51, %v1367_v57 }
 0xbd4   :  { %v1372_v62 = vmul.f32 %v1370_v58, %v1370_v58 }
 0xbd5   :  { %v1371_v63 = vmul.f32 %v1369_v60, %v1369_v60 }
 0xbd6   :  { %v1376_v1 = vsel %vm188_vm3, %v1372_v62, 0.0 }
 0xbd7   :  { %1377 = vadd.xlane.f32.xlu1 %v1376_v1  ;;  %v1373_v3 = vsel %vm188_vm3, %v1371_v63, 0.0 }
 0xbd8   :  { %1374 = vadd.xlane.f32.xlu0 %v1373_v3 }
 0xc64   :  { %v1378_v9 = vpop.xlane.xlu1 %1377 }
 0xc65   :  { %v1380_v10 = vmul.f32 0.03125, %v1378_v9  ;;  %v1375_v11 = vpop.xlane.xlu0 %1374 }
 0xc66   :  { %v1379_v12 = vmul.f32 0.03125, %v1375_v11 }
 0xc67   :  { %v1382_v13 = vadd.f32 1e-12, %v1380_v10 }
 0xc68   :  { %v1381_v14 = vadd.f32 1e-12, %v1379_v12 }
 0xc69   :  { %1989 = vrsqrt.f32 %v1382_v13 }
 0xc6a   :  { %1991 = vrsqrt.f32 %v1381_v14 }
 0xc73   :  { %v1990_v18 = vpop.eup %1989 }
 0xc74   :  { %v1992_v20 = vpop.eup %1991  ;;  %v1386_v21 = vmul.f32 %v1990_v18, %v1370_v58 }
 0xc75   :  { %v1385_v22 = vmul.f32 %v1992_v20, %v1369_v60 }
 0xc76   :  { %v1394_v24 = vmul.f32 %v1675_v19, %v1386_v21 }
 0xc77   :  { %v1393_v25 = vmul.f32 %v1675_v19, %v1385_v22 }
 0xc78   :  { %v1402_v26 = vadd.f32 %v1676_v23, %v1394_v24 }
 0xc79   :  { %v1401_v27 = vadd.f32 %v1676_v23, %v1393_v25 }
 0xc7a   :  { %v1404_v28 = vrot.slane %v1402_v26, 7 }
 0xc7c   :  { %v1407_v16 = vsel %vm1406_vm7, %v1401_v27, %v1404_v28 }
 0xc7d   :  { %1866 = vmatmul.mubr.msk.f32.vlgmr.msra.gmra.mrb[14].mxu1 %vm188_vm3, %v1407_v16 }
 0xc7e   :  { %1876 = vmatprep.mubr.msk.f32.mxu1 %vm2049_vm4, %v2048_v15  ;;  %1943 = vmatpush3.bf16.msra.mxu1 %v1942_v32 }
 0xc7f   :  { %1944 = vmatprep.subr.bf16.mxu1 %v2056_v8 }
 0xc82   :  { %1946 = vmatpush3.bf16.msra.mxu1 %v1945_v34 }
 0xd50   :  { %v1488_v36 = vpop.f32.mrb[14].mxu1 }
 0xd51   :  { %v1489_v37 = vadd.f32 %v1677_v35, %v1488_v36  ;;  %v1867_v38 = vpop.f32.mrb[15].mxu1 }
 0xd53   :  { %1993 = vtanh.f32 %v1489_v37 }
 0xd5d   :  { %v1994_v39 = vpop.eup %1993 }
 0xd5e   :  { %1877 = vmatmul.mubr.msk.f32.vlgmr.msra.gmra.mrb[16].mxu1 %vm188_vm3, %v1994_v39 }
 0xe31   :  { %v1573_v41 = vpop.f32.mrb[16].mxu1 }
 0xe32   :  { %v1574_v42 = vadd.f32 %v1679_v40, %v1573_v41  ;;  %v1878_v43 = vpop.f32.mrb[17].mxu1 }
 0xe34   :  { %v1586_v44 = vsel %vm1577_vm8, %v1574_v42, -inf  ;;  %1578 = vst.msk [vmem:[#allocation2] sm:$0x3] %vm1577_vm8, %v1574_v42 }
 0xe35   :  { %1587 = vmax.xlane.f32.xlu1 %v1586_v44 }
 0xe46   :  { %1581 = vperm.xlu1 %1960, %v1579_v45  }
 0xec2   :  { %v1588_v46 = vpop.xlane.xlu1 %1587 }
 0xec3   :  { %v1589_v47 = vsub.f32 %v1574_v42, %v1588_v46 }
 0xec5   :  { %v1590_v48 = vmul.f32 1.442695, %v1589_v47 }
 0xec6   :  { %v1582_v59 = vpop.permute.xlu1 %1581 }
 0xec7   :  { %1995 = vpow2.f32 %v1590_v48  ;;  %vm1583_vm9 = vcmp.eq.s32.totalorder %v1582_v59, %v2216_v17 }
 0xec8   :  { %v1681_v53 = vsel %vm1583_vm9, 1.0, %v2048_v15 }
 0xed1   :  { %v1996_v49 = vpop.eup %1995 }
 0xed2   :  { %v1592_v50 = vsel %vm1577_vm8, %v1996_v49, 0.0 }
 0xed3   :  { %1593 = vadd.xlane.f32.xlu0 %v1592_v50 }
 0xf60   :  { %v1594_v61 = vpop.xlane.xlu0 %1593 }
 0xf61   :  { %1997 = vlog2.f32 %v1594_v61 }
 0xf6b   :  { %v1998_v51 = vpop.eup %1997 }
 0xf6c   :  { %v1596_v52 = vmul.f32 0.6931472, %v1998_v51 }
 0xf6e   :  { %v1597_v54 = vsub.f32 %v1589_v47, %v1596_v52 }
 0xf70   :  { %v1598_v55 = vmul.f32 %v1681_v53, %v1597_v54 }
 0xf72   :  { %v1599_v56 = vsel %vm1577_vm8, %v1598_v55, 0.0 }
 0xf73   :  { %1600 = vadd.xlane.f32.xlu0 %v1599_v56 }
 0xf74   :  { %2010 = shalt.err (!%p2007_p4)
}
 0xf75   :  { %s2011_s13 = scalar_lea.hbm %s2507_s23, 32 }
 0xf76   :  { %p2012_p5 = scmp.ne.s32.totalorder %s2507_s23, %s2011_s13  ;;  %p2015_p6 = scmp.lt.u32.totalorder %s2011_s13, %s2507_s23 }
 0xf78   :  { %p2017_p7 = pnand %p2015_p6, %p2012_p5 }
 0xf7a   :  { %2020 = shalt.err (!%p2017_p7)
}
 0xf7b   :  { %1624 = dma.vmem_to_hbm [thread:$0]  %s1622_s15, 32, %s2507_s23, [#allocation3]   ;;  %vm1603_vm10 = vcmask 1041408   ;;  %vm1613_vm11 = vcmask 0  }
 0xf7c   :  { %s2058_s19 = smov [#allocation4]  }
 0xf7d   :  { %s1631_s28 = sshll.u32 %s2058_s19, 4  ;;  %s1632_s28 = int_to_ptr.vmem [resolvable:$true] %s1631_s28 }
 0xf7e   :  { %s2021_s17 = scalar_lea.vmem %s1632_s28, 16  ;;  %s2025_s10 = scalar_lea.vmem %s1632_s28, 32 }
 0xf7f   :  { %p2022_p8 = scmp.ne.s32.totalorder %s1632_s28, %s2021_s17  ;;  %p2026_p9 = scmp.lt.s32.totalorder %s1632_s28, %s1632_s28 }
 0xf80   :  { %p2027_p10 = scmp.lt.s32.totalorder %s2025_s10, %s2021_s17 }
 0xf82   :  { %p2028_p11 = por %p2027_p10, %p2026_p9 }
 0xf84   :  { %p2029_p12 = pnand %p2028_p11, %p2022_p8 }
0x1000   :  { %v1601_v15 = vpop.xlane.xlu0 %1600 }
0x1001   :  { %v1602_v17 = vsub.f32 0.0, %v1601_v15 }
0x1003   :  { %v1604_v57 = vsel %vm1603_vm10, %v1602_v17, 0.0 }
0x1004   :  { %v1605_v58 = vrot.slane %v1604_v57, 4 }
0x1006   :  { %v1606_v60 = vadd.f32 %v1605_v58, %v1604_v57 }
0x1008   :  { %v1607_v62 = vrot.slane %v1606_v60, 2 }
0x100a   :  { %v1608_v63 = vadd.f32 %v1607_v62, %v1606_v60 }
0x100c   :  { %v1609_v1 = vrot.slane %v1608_v63, 1 }
0x100e   :  { %v1610_v3 = vadd.f32 %v1609_v1, %v1608_v63 }
0x1010   :  { %v1612_v4 = vmul.f32 0.5, %v1610_v3 }
0x1012   :  { %1614 = vst.msk [vmem:[#allocation4] sm:$0x1] %vm1613_vm11, %v1612_v4 }
0x1013   :  { %2032 = shalt.err (!%p2029_p12)
}
0x1014   :  { %s2033_s29 = scalar_lea.hbm %s2508_s24, 16 }
0x1015   :  { %p2034_p13 = scmp.ne.s32.totalorder %s2508_s24, %s2033_s29  ;;  %p2037_p0 = scmp.lt.u32.totalorder %s2033_s29, %s2508_s24 }
0x1017   :  { %p2039_p1 = pnand %p2037_p0, %p2034_p13 }
0x1019   :  { %2042 = shalt.err (!%p2039_p1)
}
0x101a   :  { %1634 = dma.vmem_to_hbm [thread:$0]  %s1632_s28, 16, %s2508_s24, [#allocation5]  }
0x101b   :  { %2043 = dma.done.wait [#allocation3], 32  }
0x101c   :  { %2044 = vsyncadd [#allocation3], 4294967264 }
0x101d   :  { %2045 = dma.done.wait [#allocation5], 16  }
0x101e   :  { %2046 = vsyncadd [#allocation5], 4294967280 }
0x101f   :  { %1641 = vsyncpa [#allocation3], 1 }
0x1020   :  { %1642 = vsyncpa [#allocation5], 1 }

</bundles_post_ra>
